<compile_context>
chip_gen: v7x
topology: tpu7x:2x2x1
jax: 0.10.0
libtpu: 0.0.40
codegen_flags: <defaults>
</compile_context>

<pallas_src>
import functools
import math

import numpy as np
import jax
import jax.numpy as jnp
from jax.experimental import pallas as pl
from jax.experimental.pallas import tpu as pltpu

_P1 = 196        # 14*14 conv1 output positions
_P2 = 49         # 7*7  conv2 output positions
_P2P = 56        # _P2 padded to a multiple of 8 (aligned row-block slicing)
_P3 = 16         # 4*4  conv3 output positions
_TAPS = 9        # 3x3 kernel taps
_TAPS_PAD = 16   # layer-1 taps padded so the patch lane dim equals BC


# ------------------------------ Pallas kernel -------------------------------

def _mnist_cnn_fused_kernel(p1_ref, w1_ref, b1_ref, g2_ref, w2_ref, b2_ref,
                            g3_ref, w3_ref, b3_ref, out_ref, wide_ref):
    """Fused conv1/2/3 + ReLU + 4x4 avg-pool for `tiles_per_step` batch tiles.

    Batch is folded into the matmul lane (N) dimension: BC = btile*16.
      p1:   (TS, 196, BC)  bf16  layer-1 im2col patches (16 taps/img, lane-dense)
      w1:   (BC, BC)       bf16  block-diag conv1 weights (rows: b*16 + tap)
      g2:   (9*56, 196)    bf16  stacked binary gathers (taps along M, pad rows 0)
      w2:   (9*BC, BC)     bf16  block-diag conv2 weights, taps stacked along K
      g3:   (9*16, 56)     bf16
      w3:   (9*BC, BC)     bf16
      b*:   (1, BC)        f32
      out:  (TS, BC)       f32
      wide: (56, 9*BC)     bf16  scratch: taps repacked into the lane dimension
    """
    f32, bf16 = jnp.float32, jnp.bfloat16
    ts = p1_ref.shape[0]
    bc = out_ref.shape[-1]

    @pl.loop(0, ts)
    def _(t):
        # conv1 + ReLU: one lane-dense MXU matmul for the whole batch tile.
        h = jnp.dot(p1_ref[t], w1_ref[...], preferred_element_type=f32)
        h = jnp.maximum(h + b1_ref[...], 0.0)                        # (196, BC)

        # conv2 then conv3 (+ ReLU): per layer, 2 MXU matmuls instead of 18.
        for g_ref, w_ref, b_ref, p_out in ((g2_ref, w2_ref, b2_ref, _P2P),
                                           (g3_ref, w3_ref, b3_ref, _P3)):
            # (a) all 9 gather taps in a single matmul (taps stacked along M);
            #     binary gathers are exact even with bf16 operands.
            tap = jnp.dot(g_ref[...], h.astype(bf16),
                          preferred_element_type=f32)                # (9*p_out, BC)
            # (b) repack tap j into lane block j of the scratch: aligned 8-row
            #     value slices + full-lane-tile stores, no relayout shuffles.
            for j in range(_TAPS):
                wide_ref[0:p_out, j * bc:(j + 1) * bc] = (
                    tap[j * p_out:(j + 1) * p_out].astype(bf16))
            # (c) one weight matmul with the 9 taps concatenated along K: the
            #     tap accumulation happens inside the MXU K-reduction.
            h = jnp.dot(wide_ref[0:p_out, :], w_ref[...],
                        preferred_element_type=f32)                  # (p_out, BC)
            h = jnp.maximum(h + b_ref[...], 0.0)

        # F.avg_pool2d(x, 4) + view(-1, C) == mean over the 16 spatial rows.
        out_ref[pl.ds(t, 1), :] = jnp.mean(h, axis=0, keepdims=True)


# ------------------------- one-time host-side prep ---------------------------

def _gather_stack(h_in, w_in, h_out, w_out, p_out_pad, p_in):
    """Stacked binary gather matrix (9*p_out_pad, p_in) for a 3x3/s2/p1 conv.

    Row (j*p_out_pad + oh*w_out + ow) of tap j=kh*3+kw selects input position
    (2*oh+kh-1, 2*ow+kw-1); out-of-bounds taps and padded rows stay all-zero.
    """
    g = np.zeros((_TAPS * p_out_pad, p_in), np.float32)
    for kh in range(3):
        for kw in range(3):
            j = kh * 3 + kw
            for oh in range(h_out):
                ih = 2 * oh + kh - 1
                if not 0 <= ih < h_in:
                    continue
                for ow in range(w_out):
                    iw = 2 * ow + kw - 1
                    if not 0 <= iw < w_in:
                        continue
                    g[j * p_out_pad + oh * w_out + ow, ih * w_in + iw] = 1.0
    return g


def prepare_mnist_cnn(params, btile):
    """One-time preprocessing of the conv weights (hoisted out of the per-call
    path): block-diagonalise over the batch tile, stack the 9 taps along K,
    tile the biases, and build the stacked binary gather matrices."""
    (w1, b1), (w2, b2), (w3, b3) = [
        (np.asarray(w, np.float32), np.asarray(b, np.float32)) for w, b in params]
    c1, c2, c3 = w1.shape[0], w2.shape[0], w3.shape[0]
    assert w1.shape[1] == 1 and w2.shape[1] == c1 and w3.shape[1] == c2
    eye = np.eye(btile, dtype=np.float32)

    # conv1: (cout,1,3,3) -> (16 taps, cout); 7 zero taps pad the patch lane
    # dimension to 16 per image so p1 is lane-dense. Block-diag over the tile.
    w1m = np.zeros((_TAPS_PAD, c1), np.float32)
    w1m[:_TAPS] = np.transpose(w1, (2, 3, 1, 0)).reshape(_TAPS, c1)
    w1bd = np.kron(eye, w1m)                                   # (btile*16, BC)

    def stack_bd(w):
        # (cout,cin,3,3) -> (9*btile*cin, btile*cout): block-diag over the
        # batch tile per tap, then the 9 taps stacked along K.
        cout, cin = w.shape[0], w.shape[1]
        wm = np.transpose(w, (2, 3, 1, 0)).reshape(_TAPS, cin, cout)
        bd = np.einsum('ab,jcd->jacbd', eye, wm)               # (9,bt,cin,bt,cout)
        return bd.reshape(_TAPS * btile * cin, btile * cout)

    w2k = stack_bd(w2)                                         # (9*BC, BC)
    w3k = stack_bd(w3)

    g2 = _gather_stack(14, 14, 7, 7, _P2P, _P1)                # (504, 196)
    g3 = _gather_stack(7, 7, 4, 4, _P3, _P2P)                  # (144, 56)

    bf16, f32 = jnp.bfloat16, jnp.float32
    return dict(
        w1=jnp.asarray(w1bd, bf16),
        b1=jnp.asarray(np.tile(b1, btile)[None, :], f32),
        w2=jnp.asarray(w2k, bf16),
        b2=jnp.asarray(np.tile(b2, btile)[None, :], f32),
        w3=jnp.asarray(w3k, bf16),
        b3=jnp.asarray(np.tile(b3, btile)[None, :], f32),
        g2=jnp.asarray(g2, bf16),
        g3=jnp.asarray(g3, bf16),
    )


def _default_btile():
    """BC = btile*16 should match the MXU width: 128 on v5e and earlier, 256 on
    v6e/v7x. Only affects performance, never correctness."""
    try:
        kind = jax.devices()[0].device_kind.lower()
    except Exception:
        return 8
    return 16 if ("v6" in kind or "v7" in kind) else 8


# -------------------------------- forward ------------------------------------

def _im2col_l1(x_img):
    """(B, 28, 28) -> (B, 196, 16): 3x3/s2/p1 patches, padded to 16 taps/image."""
    b = x_img.shape[0]
    xp = jnp.pad(x_img, ((0, 0), (1, 1), (1, 1)))
    cols = [xp[:, kh:kh + 28:2, kw:kw + 28:2]
            for kh in range(3) for kw in range(3)]
    patches = jnp.stack(cols, axis=-1).reshape(b, _P1, _TAPS)
    return jnp.pad(patches, ((0, 0), (0, 0), (0, _TAPS_PAD - _TAPS)))


def mnist_cnn_forward(x_flat, prep, *, btile, tiles_per_step=8):
    """Pallas implementation of Mnist_CNN.forward.  x_flat: (B, 784) f32."""
    bc = prep['b1'].shape[1]                       # btile * 16
    n_ch = bc // btile                             # 16 output channels
    ts = tiles_per_step
    B = x_flat.shape[0]
    T = max(1, -(-B // (ts * btile)))              # grid steps (>=2 shards on v7x)
    Bp = T * ts * btile                            # batch always padded UP
    if Bp != B:
        x_flat = jnp.pad(x_flat, ((0, Bp - B), (0, 0)))

    # Layer-1 im2col on the raw input, batch folded into lanes:
    # (Bp, 196, 16) -> (T, TS, 196, btile*16) with column index b_local*16 + tap.
    patches = _im2col_l1(x_flat.reshape(Bp, 28, 28))
    p1 = patches.reshape(T, ts, btile, _P1, _TAPS_PAD)
    p1 = jnp.transpose(p1, (0, 1, 3, 2, 4)).reshape(T, ts, _P1, bc)
    p1 = p1.astype(jnp.bfloat16)

    out = pl.pallas_call(
        _mnist_cnn_fused_kernel,
        out_shape=jax.ShapeDtypeStruct((T, ts, bc), jnp.float32),
        grid=(T,),
        in_specs=[
            pl.BlockSpec((None, ts, _P1, bc), lambda i: (i, 0, 0, 0)),
            pl.BlockSpec((bc, bc), lambda i: (0, 0)),
            pl.BlockSpec((1, bc), lambda i: (0, 0)),
            pl.BlockSpec((_TAPS * _P2P, _P1), lambda i: (0, 0)),
            pl.BlockSpec((_TAPS * bc, bc), lambda i: (0, 0)),
            pl.BlockSpec((1, bc), lambda i: (0, 0)),
            pl.BlockSpec((_TAPS * _P3, _P2P), lambda i: (0, 0)),
            pl.BlockSpec((_TAPS * bc, bc), lambda i: (0, 0)),
            pl.BlockSpec((1, bc), lambda i: (0, 0)),
        ],
        out_specs=pl.BlockSpec((None, ts, bc), lambda i: (i, 0, 0)),
        scratch_shapes=[pltpu.VMEM((_P2P, _TAPS * bc), jnp.bfloat16)],
        compiler_params=pltpu.CompilerParams(
            dimension_semantics=("parallel",)),    # batch-tile steps -> TCs
    )(p1, prep['w1'], prep['b1'], prep['g2'], prep['w2'], prep['b2'],
      prep['g3'], prep['w3'], prep['b3'])

    return out.reshape(Bp, n_ch)[:B]               # == xb.view(-1, C)


def make_mnist_cnn(params, *, btile=None, tiles_per_step=8):
    """Builds the forward fn: one-time weight prep + a jitted Pallas forward."""
    if btile is None:
        btile = _default_btile()
    prep = prepare_mnist_cnn(params, btile)
    fwd = jax.jit(functools.partial(mnist_cnn_forward, btile=btile,
                                    tiles_per_step=tiles_per_step))
    return lambda x_flat: fwd(x_flat, prep)


# ------------------------------- reference -----------------------------------

def reference_forward(x_flat, params):
    """Pure-JAX (XLA conv, full f32 precision) reference of the torch forward."""
    B = x_flat.shape[0]
    h = x_flat.reshape(B, 1, 28, 28)
    for w, b in params:
        h = jax.lax.conv_general_dilated(
            h, w, window_strides=(2, 2), padding=((1, 1), (1, 1)),
            dimension_numbers=("NCHW", "OIHW", "NCHW"),
            precision=jax.lax.Precision.HIGHEST)
        h = jax.nn.relu(h + b.reshape(1, -1, 1, 1))
    # F.avg_pool2d(x, 4) on a 4x4 map + view(-1, C) == mean over H, W.
    return jnp.mean(h, axis=(2, 3))


def _init_conv(key, cin, cout, k=3):
    """Deterministic PyTorch-style uniform init for Conv2d(cin, cout, k)."""
    kw_key, kb_key = jax.random.split(key)
    bound = 1.0 / math.sqrt(cin * k * k)
    w = jax.random.uniform(kw_key, (cout, cin, k, k), jnp.float32,
                           minval=-bound, maxval=bound)
    b = jax.random.uniform(kb_key, (cout,), jnp.float32,
                           minval=-bound, maxval=bound)
    return w, b


# ---------------------------------- main -------------------------------------

if __name__ == "__main__":
    key = jax.random.PRNGKey(0)
    kx, k1, k2, k3 = jax.random.split(key, 4)

    batch = 2
    x = jax.random.normal(kx, (batch, 28 * 28), jnp.float32)     # (B, 784)

    params = [
        _init_conv(k1, 1, 16),     # conv1: 1 -> 16, k3 s2 p1
        _init_conv(k2, 16, 16),    # conv2: 16 -> 16
        _init_conv(k3, 16, 16),    # conv3: 16 -> 16
    ]

    fwd = make_mnist_cnn(params)
    out = jax.block_until_ready(fwd(x))
    assert out.shape == (batch, 16), out.shape

    ref = jax.block_until_ready(reference_forward(x, params))
    max_diff = float(jnp.max(jnp.abs(out - ref)))
    # bf16 matmul operands (f32 accumulation) vs an f32 Precision.HIGHEST
    # reference: allow ~2e-2 absolute/relative slack (gathers stay exact).
    assert bool(jnp.allclose(out, ref, atol=2e-2, rtol=2e-2)), (
        f"mismatch vs reference: max abs diff {max_diff}")

    print("KERNEL_OK")
</pallas_src>

<mosaic_0001>
module attributes {stable_mosaic.version = 11 : i64} {
  func.func @_mnist_cnn_fused_kernel(%arg0: i32, %arg1: memref<1x8x196x128xbf16, #tpu.memory_space<vmem>>, %arg2: memref<128x128xbf16, #tpu.memory_space<vmem>>, %arg3: memref<1x128xf32, #tpu.memory_space<vmem>>, %arg4: memref<504x196xbf16, #tpu.memory_space<vmem>>, %arg5: memref<1152x128xbf16, #tpu.memory_space<vmem>>, %arg6: memref<1x128xf32, #tpu.memory_space<vmem>>, %arg7: memref<144x56xbf16, #tpu.memory_space<vmem>>, %arg8: memref<1152x128xbf16, #tpu.memory_space<vmem>>, %arg9: memref<1x128xf32, #tpu.memory_space<vmem>>, %arg10: memref<1x8x128xf32, #tpu.memory_space<vmem>>, %arg11: memref<56x1152xbf16, #tpu.memory_space<vmem>>) attributes {dimension_semantics = [#tpu.dimension_semantics<parallel>], iteration_bounds = array<i64: 1>, scalar_prefetch = 0 : i64, scratch_operands = 1 : i64, tpu.core_type = #tpu.core_type<tc>, window_params = [{transform_indices = @transform_0, window_bounds = array<i64: 1, 8, 196, 128>}, {pipeline_mode = #tpu.pipeline_mode<synchronous>, transform_indices = @transform_1, window_bounds = array<i64: 128, 128>}, {pipeline_mode = #tpu.pipeline_mode<synchronous>, transform_indices = @transform_2, window_bounds = array<i64: 1, 128>}, {pipeline_mode = #tpu.pipeline_mode<synchronous>, transform_indices = @transform_3, window_bounds = array<i64: 504, 196>}, {pipeline_mode = #tpu.pipeline_mode<synchronous>, transform_indices = @transform_4, window_bounds = array<i64: 1152, 128>}, {pipeline_mode = #tpu.pipeline_mode<synchronous>, transform_indices = @transform_5, window_bounds = array<i64: 1, 128>}, {pipeline_mode = #tpu.pipeline_mode<synchronous>, transform_indices = @transform_6, window_bounds = array<i64: 144, 56>}, {pipeline_mode = #tpu.pipeline_mode<synchronous>, transform_indices = @transform_7, window_bounds = array<i64: 1152, 128>}, {pipeline_mode = #tpu.pipeline_mode<synchronous>, transform_indices = @transform_8, window_bounds = array<i64: 1, 128>}, {transform_indices = @transform_9, window_bounds = array<i64: 1, 8, 128>}]} {
    %c0_i32 = arith.constant 0 : i32
    %c8_i32 = arith.constant 8 : i32
    %0 = arith.addi %c0_i32, %c8_i32 : i32
    %c1_i32 = arith.constant 1 : i32
    scf.for %arg12 = %c0_i32 to %0 step %c1_i32  : i32 {
      %c1_i32_1 = arith.constant 1 : i32
      %1 = arith.muli %arg12, %c1_i32_1 : i32
      %c0_i32_2 = arith.constant 0 : i32
      %2 = arith.addi %c0_i32_2, %1 : i32
      %c0 = arith.constant 0 : index
      %3 = arith.index_cast %2 : i32 to index
      %c0_3 = arith.constant 0 : index
      %c0_4 = arith.constant 0 : index
      %4 = vector.load %arg1[%c0, %3, %c0_3, %c0_4] : memref<1x8x196x128xbf16, #tpu.memory_space<vmem>>, vector<1x1x196x128xbf16>
      %5 = vector.shape_cast %4 : vector<1x1x196x128xbf16> to vector<196x128xbf16>
      %c0_5 = arith.constant 0 : index
      %c0_6 = arith.constant 0 : index
      %6 = vector.load %arg2[%c0_5, %c0_6] : memref<128x128xbf16, #tpu.memory_space<vmem>>, vector<128x128xbf16>
      %cst = arith.constant dense<0.000000e+00> : vector<196x128xf32>
      %7 = tpu.matmul %5, %6, %cst {dimension_numbers = #tpu.dot_dimension_numbers<[1], [0], [0], [1], [0, 0, 1, 1], [], []>} : vector<196x128xbf16>, vector<128x128xbf16>, vector<196x128xf32> -> vector<196x128xf32>
      %c0_7 = arith.constant 0 : index
      %c0_8 = arith.constant 0 : index
      %8 = vector.load %arg3[%c0_7, %c0_8] : memref<1x128xf32, #tpu.memory_space<vmem>>, vector<1x128xf32>
      %9 = vector.broadcast %8 : vector<1x128xf32> to vector<196x128xf32>
      %10 = arith.addf %7, %9 : vector<196x128xf32>
      %cst_9 = arith.constant 0.000000e+00 : f32
      %11 = vector.broadcast %cst_9 : f32 to vector<196x128xf32>
      %12 = arith.maximumf %10, %11 : vector<196x128xf32>
      %c0_10 = arith.constant 0 : index
      %c0_11 = arith.constant 0 : index
      %13 = vector.load %arg4[%c0_10, %c0_11] : memref<504x196xbf16, #tpu.memory_space<vmem>>, vector<504x196xbf16>
      %14 = arith.truncf %12 : vector<196x128xf32> to vector<196x128xbf16>
      %cst_12 = arith.constant dense<0.000000e+00> : vector<504x128xf32>
      %15 = tpu.matmul %13, %14, %cst_12 {dimension_numbers = #tpu.dot_dimension_numbers<[1], [0], [0], [1], [0, 0, 1, 1], [], []>} : vector<504x196xbf16>, vector<196x128xbf16>, vector<504x128xf32> -> vector<504x128xf32>
      %16 = vector.extract_strided_slice %15 {offsets = [0, 0], sizes = [56, 128], strides = [1, 1]} : vector<504x128xf32> to vector<56x128xf32>
      %17 = arith.truncf %16 : vector<56x128xf32> to vector<56x128xbf16>
      %c0_13 = arith.constant 0 : index
      %c0_14 = arith.constant 0 : index
      %18 = vector.load %arg11[%c0_13, %c0_14] : memref<56x1152xbf16, #tpu.memory_space<vmem>>, vector<56x128xbf16>
      tpu.vector_store %arg11[%c0_13, %c0_14], %17 {strides = array<i32>} : memref<56x1152xbf16, #tpu.memory_space<vmem>>, vector<56x128xbf16>,
      %19 = vector.extract_strided_slice %15 {offsets = [56, 0], sizes = [56, 128], strides = [1, 1]} : vector<504x128xf32> to vector<56x128xf32>
      %20 = arith.truncf %19 : vector<56x128xf32> to vector<56x128xbf16>
      %c0_15 = arith.constant 0 : index
      %c128 = arith.constant 128 : index
      %21 = vector.load %arg11[%c0_15, %c128] : memref<56x1152xbf16, #tpu.memory_space<vmem>>, vector<56x128xbf16>
      tpu.vector_store %arg11[%c0_15, %c128], %20 {strides = array<i32>} : memref<56x1152xbf16, #tpu.memory_space<vmem>>, vector<56x128xbf16>,
      %22 = vector.extract_strided_slice %15 {offsets = [112, 0], sizes = [56, 128], strides = [1, 1]} : vector<504x128xf32> to vector<56x128xf32>
      %23 = arith.truncf %22 : vector<56x128xf32> to vector<56x128xbf16>
      %c0_16 = arith.constant 0 : index
      %c256 = arith.constant 256 : index
      %24 = vector.load %arg11[%c0_16, %c256] : memref<56x1152xbf16, #tpu.memory_space<vmem>>, vector<56x128xbf16>
      tpu.vector_store %arg11[%c0_16, %c256], %23 {strides = array<i32>} : memref<56x1152xbf16, #tpu.memory_space<vmem>>, vector<56x128xbf16>,
      %25 = vector.extract_strided_slice %15 {offsets = [168, 0], sizes = [56, 128], strides = [1, 1]} : vector<504x128xf32> to vector<56x128xf32>
      %26 = arith.truncf %25 : vector<56x128xf32> to vector<56x128xbf16>
      %c0_17 = arith.constant 0 : index
      %c384 = arith.constant 384 : index
      %27 = vector.load %arg11[%c0_17, %c384] : memref<56x1152xbf16, #tpu.memory_space<vmem>>, vector<56x128xbf16>
      tpu.vector_store %arg11[%c0_17, %c384], %26 {strides = array<i32>} : memref<56x1152xbf16, #tpu.memory_space<vmem>>, vector<56x128xbf16>,
      %28 = vector.extract_strided_slice %15 {offsets = [224, 0], sizes = [56, 128], strides = [1, 1]} : vector<504x128xf32> to vector<56x128xf32>
      %29 = arith.truncf %28 : vector<56x128xf32> to vector<56x128xbf16>
      %c0_18 = arith.constant 0 : index
      %c512 = arith.constant 512 : index
      %30 = vector.load %arg11[%c0_18, %c512] : memref<56x1152xbf16, #tpu.memory_space<vmem>>, vector<56x128xbf16>
      tpu.vector_store %arg11[%c0_18, %c512], %29 {strides = array<i32>} : memref<56x1152xbf16, #tpu.memory_space<vmem>>, vector<56x128xbf16>,
      %31 = vector.extract_strided_slice %15 {offsets = [280, 0], sizes = [56, 128], strides = [1, 1]} : vector<504x128xf32> to vector<56x128xf32>
      %32 = arith.truncf %31 : vector<56x128xf32> to vector<56x128xbf16>
      %c0_19 = arith.constant 0 : index
      %c640 = arith.constant 640 : index
      %33 = vector.load %arg11[%c0_19, %c640] : memref<56x1152xbf16, #tpu.memory_space<vmem>>, vector<56x128xbf16>
      tpu.vector_store %arg11[%c0_19, %c640], %32 {strides = array<i32>} : memref<56x1152xbf16, #tpu.memory_space<vmem>>, vector<56x128xbf16>,
      %34 = vector.extract_strided_slice %15 {offsets = [336, 0], sizes = [56, 128], strides = [1, 1]} : vector<504x128xf32> to vector<56x128xf32>
      %35 = arith.truncf %34 : vector<56x128xf32> to vector<56x128xbf16>
      %c0_20 = arith.constant 0 : index
      %c768 = arith.constant 768 : index
      %36 = vector.load %arg11[%c0_20, %c768] : memref<56x1152xbf16, #tpu.memory_space<vmem>>, vector<56x128xbf16>
      tpu.vector_store %arg11[%c0_20, %c768], %35 {strides = array<i32>} : memref<56x1152xbf16, #tpu.memory_space<vmem>>, vector<56x128xbf16>,
      %37 = vector.extract_strided_slice %15 {offsets = [392, 0], sizes = [56, 128], strides = [1, 1]} : vector<504x128xf32> to vector<56x128xf32>
      %38 = arith.truncf %37 : vector<56x128xf32> to vector<56x128xbf16>
      %c0_21 = arith.constant 0 : index
      %c896 = arith.constant 896 : index
      %39 = vector.load %arg11[%c0_21, %c896] : memref<56x1152xbf16, #tpu.memory_space<vmem>>, vector<56x128xbf16>
      tpu.vector_store %arg11[%c0_21, %c896], %38 {strides = array<i32>} : memref<56x1152xbf16, #tpu.memory_space<vmem>>, vector<56x128xbf16>,
      %40 = vector.extract_strided_slice %15 {offsets = [448, 0], sizes = [56, 128], strides = [1, 1]} : vector<504x128xf32> to vector<56x128xf32>
      %41 = arith.truncf %40 : vector<56x128xf32> to vector<56x128xbf16>
      %c0_22 = arith.constant 0 : index
      %c1024 = arith.constant 1024 : index
      %42 = vector.load %arg11[%c0_22, %c1024] : memref<56x1152xbf16, #tpu.memory_space<vmem>>, vector<56x128xbf16>
      tpu.vector_store %arg11[%c0_22, %c1024], %41 {strides = array<i32>} : memref<56x1152xbf16, #tpu.memory_space<vmem>>, vector<56x128xbf16>,
      %c0_23 = arith.constant 0 : index
      %c0_24 = arith.constant 0 : index
      %43 = vector.load %arg11[%c0_23, %c0_24] : memref<56x1152xbf16, #tpu.memory_space<vmem>>, vector<56x1152xbf16>
      %c0_25 = arith.constant 0 : index
      %c0_26 = arith.constant 0 : index
      %44 = vector.load %arg5[%c0_25, %c0_26] : memref<1152x128xbf16, #tpu.memory_space<vmem>>, vector<1152x128xbf16>
      %cst_27 = arith.constant dense<0.000000e+00> : vector<56x128xf32>
      %45 = tpu.matmul %43, %44, %cst_27 {dimension_numbers = #tpu.dot_dimension_numbers<[1], [0], [0], [1], [0, 0, 1, 1], [], []>} : vector<56x1152xbf16>, vector<1152x128xbf16>, vector<56x128xf32> -> vector<56x128xf32>
      %c0_28 = arith.constant 0 : index
      %c0_29 = arith.constant 0 : index
      %46 = vector.load %arg6[%c0_28, %c0_29] : memref<1x128xf32, #tpu.memory_space<vmem>>, vector<1x128xf32>
      %47 = vector.broadcast %46 : vector<1x128xf32> to vector<56x128xf32>
      %48 = arith.addf %45, %47 : vector<56x128xf32>
      %cst_30 = arith.constant 0.000000e+00 : f32
      %49 = vector.broadcast %cst_30 : f32 to vector<56x128xf32>
      %50 = arith.maximumf %48, %49 : vector<56x128xf32>
      %c0_31 = arith.constant 0 : index
      %c0_32 = arith.constant 0 : index
      %51 = vector.load %arg7[%c0_31, %c0_32] : memref<144x56xbf16, #tpu.memory_space<vmem>>, vector<144x56xbf16>
      %52 = arith.truncf %50 : vector<56x128xf32> to vector<56x128xbf16>
      %cst_33 = arith.constant dense<0.000000e+00> : vector<144x128xf32>
      %53 = tpu.matmul %51, %52, %cst_33 {dimension_numbers = #tpu.dot_dimension_numbers<[1], [0], [0], [1], [0, 0, 1, 1], [], []>} : vector<144x56xbf16>, vector<56x128xbf16>, vector<144x128xf32> -> vector<144x128xf32>
      %54 = vector.extract_strided_slice %53 {offsets = [0, 0], sizes = [16, 128], strides = [1, 1]} : vector<144x128xf32> to vector<16x128xf32>
      %55 = arith.truncf %54 : vector<16x128xf32> to vector<16x128xbf16>
      %c0_34 = arith.constant 0 : index
      %c0_35 = arith.constant 0 : index
      %56 = vector.load %arg11[%c0_34, %c0_35] : memref<56x1152xbf16, #tpu.memory_space<vmem>>, vector<16x128xbf16>
      tpu.vector_store %arg11[%c0_34, %c0_35], %55 {strides = array<i32>} : memref<56x1152xbf16, #tpu.memory_space<vmem>>, vector<16x128xbf16>,
      %57 = vector.extract_strided_slice %53 {offsets = [16, 0], sizes = [16, 128], strides = [1, 1]} : vector<144x128xf32> to vector<16x128xf32>
      %58 = arith.truncf %57 : vector<16x128xf32> to vector<16x128xbf16>
      %c0_36 = arith.constant 0 : index
      %c128_37 = arith.constant 128 : index
      %59 = vector.load %arg11[%c0_36, %c128_37] : memref<56x1152xbf16, #tpu.memory_space<vmem>>, vector<16x128xbf16>
      tpu.vector_store %arg11[%c0_36, %c128_37], %58 {strides = array<i32>} : memref<56x1152xbf16, #tpu.memory_space<vmem>>, vector<16x128xbf16>,
      %60 = vector.extract_strided_slice %53 {offsets = [32, 0], sizes = [16, 128], strides = [1, 1]} : vector<144x128xf32> to vector<16x128xf32>
      %61 = arith.truncf %60 : vector<16x128xf32> to vector<16x128xbf16>
      %c0_38 = arith.constant 0 : index
      %c256_39 = arith.constant 256 : index
      %62 = vector.load %arg11[%c0_38, %c256_39] : memref<56x1152xbf16, #tpu.memory_space<vmem>>, vector<16x128xbf16>
      tpu.vector_store %arg11[%c0_38, %c256_39], %61 {strides = array<i32>} : memref<56x1152xbf16, #tpu.memory_space<vmem>>, vector<16x128xbf16>,
      %63 = vector.extract_strided_slice %53 {offsets = [48, 0], sizes = [16, 128], strides = [1, 1]} : vector<144x128xf32> to vector<16x128xf32>
      %64 = arith.truncf %63 : vector<16x128xf32> to vector<16x128xbf16>
      %c0_40 = arith.constant 0 : index
      %c384_41 = arith.constant 384 : index
      %65 = vector.load %arg11[%c0_40, %c384_41] : memref<56x1152xbf16, #tpu.memory_space<vmem>>, vector<16x128xbf16>
      tpu.vector_store %arg11[%c0_40, %c384_41], %64 {strides = array<i32>} : memref<56x1152xbf16, #tpu.memory_space<vmem>>, vector<16x128xbf16>,
      %66 = vector.extract_strided_slice %53 {offsets = [64, 0], sizes = [16, 128], strides = [1, 1]} : vector<144x128xf32> to vector<16x128xf32>
      %67 = arith.truncf %66 : vector<16x128xf32> to vector<16x128xbf16>
      %c0_42 = arith.constant 0 : index
      %c512_43 = arith.constant 512 : index
      %68 = vector.load %arg11[%c0_42, %c512_43] : memref<56x1152xbf16, #tpu.memory_space<vmem>>, vector<16x128xbf16>
      tpu.vector_store %arg11[%c0_42, %c512_43], %67 {strides = array<i32>} : memref<56x1152xbf16, #tpu.memory_space<vmem>>, vector<16x128xbf16>,
      %69 = vector.extract_strided_slice %53 {offsets = [80, 0], sizes = [16, 128], strides = [1, 1]} : vector<144x128xf32> to vector<16x128xf32>
      %70 = arith.truncf %69 : vector<16x128xf32> to vector<16x128xbf16>
      %c0_44 = arith.constant 0 : index
      %c640_45 = arith.constant 640 : index
      %71 = vector.load %arg11[%c0_44, %c640_45] : memref<56x1152xbf16, #tpu.memory_space<vmem>>, vector<16x128xbf16>
      tpu.vector_store %arg11[%c0_44, %c640_45], %70 {strides = array<i32>} : memref<56x1152xbf16, #tpu.memory_space<vmem>>, vector<16x128xbf16>,
      %72 = vector.extract_strided_slice %53 {offsets = [96, 0], sizes = [16, 128], strides = [1, 1]} : vector<144x128xf32> to vector<16x128xf32>
      %73 = arith.truncf %72 : vector<16x128xf32> to vector<16x128xbf16>
      %c0_46 = arith.constant 0 : index
      %c768_47 = arith.constant 768 : index
      %74 = vector.load %arg11[%c0_46, %c768_47] : memref<56x1152xbf16, #tpu.memory_space<vmem>>, vector<16x128xbf16>
      tpu.vector_store %arg11[%c0_46, %c768_47], %73 {strides = array<i32>} : memref<56x1152xbf16, #tpu.memory_space<vmem>>, vector<16x128xbf16>,
      %75 = vector.extract_strided_slice %53 {offsets = [112, 0], sizes = [16, 128], strides = [1, 1]} : vector<144x128xf32> to vector<16x128xf32>
      %76 = arith.truncf %75 : vector<16x128xf32> to vector<16x128xbf16>
      %c0_48 = arith.constant 0 : index
      %c896_49 = arith.constant 896 : index
      %77 = vector.load %arg11[%c0_48, %c896_49] : memref<56x1152xbf16, #tpu.memory_space<vmem>>, vector<16x128xbf16>
      tpu.vector_store %arg11[%c0_48, %c896_49], %76 {strides = array<i32>} : memref<56x1152xbf16, #tpu.memory_space<vmem>>, vector<16x128xbf16>,
      %78 = vector.extract_strided_slice %53 {offsets = [128, 0], sizes = [16, 128], strides = [1, 1]} : vector<144x128xf32> to vector<16x128xf32>
      %79 = arith.truncf %78 : vector<16x128xf32> to vector<16x128xbf16>
      %c0_50 = arith.constant 0 : index
      %c1024_51 = arith.constant 1024 : index
      %80 = vector.load %arg11[%c0_50, %c1024_51] : memref<56x1152xbf16, #tpu.memory_space<vmem>>, vector<16x128xbf16>
      tpu.vector_store %arg11[%c0_50, %c1024_51], %79 {strides = array<i32>} : memref<56x1152xbf16, #tpu.memory_space<vmem>>, vector<16x128xbf16>,
      %c0_52 = arith.constant 0 : index
      %c0_53 = arith.constant 0 : index
      %81 = vector.load %arg11[%c0_52, %c0_53] : memref<56x1152xbf16, #tpu.memory_space<vmem>>, vector<16x1152xbf16>
      %c0_54 = arith.constant 0 : index
      %c0_55 = arith.constant 0 : index
      %82 = vector.load %arg8[%c0_54, %c0_55] : memref<1152x128xbf16, #tpu.memory_space<vmem>>, vector<1152x128xbf16>
      %cst_56 = arith.constant dense<0.000000e+00> : vector<16x128xf32>
      %83 = tpu.matmul %81, %82, %cst_56 {dimension_numbers = #tpu.dot_dimension_numbers<[1], [0], [0], [1], [0, 0, 1, 1], [], []>} : vector<16x1152xbf16>, vector<1152x128xbf16>, vector<16x128xf32> -> vector<16x128xf32>
      %c0_57 = arith.constant 0 : index
      %c0_58 = arith.constant 0 : index
      %84 = vector.load %arg9[%c0_57, %c0_58] : memref<1x128xf32, #tpu.memory_space<vmem>>, vector<1x128xf32>
      %85 = vector.broadcast %84 : vector<1x128xf32> to vector<16x128xf32>
      %86 = arith.addf %83, %85 : vector<16x128xf32>
      %cst_59 = arith.constant 0.000000e+00 : f32
      %87 = vector.broadcast %cst_59 : f32 to vector<16x128xf32>
      %88 = arith.maximumf %86, %87 : vector<16x128xf32>
      %cst_60 = arith.constant dense<0.000000e+00> : vector<128xf32>
      %89 = vector.multi_reduction <add>, %88, %cst_60 [0] : vector<16x128xf32> to vector<128xf32>
      %90 = vector.shape_cast %89 : vector<128xf32> to vector<1x128xf32>
      %cst_61 = arith.constant 1.600000e+01 : f32
      %91 = vector.broadcast %cst_61 : f32 to vector<1x128xf32>
      %92 = arith.divf %90, %91 : vector<1x128xf32>
      %c0_62 = arith.constant 0 : index
      %93 = arith.index_cast %2 : i32 to index
      %c0_63 = arith.constant 0 : index
      %94 = vector.load %arg10[%c0_62, %93, %c0_63] : memref<1x8x128xf32, #tpu.memory_space<vmem>>, vector<1x1x128xf32>
      %95 = vector.shape_cast %94 : vector<1x1x128xf32> to vector<1x128xf32>
      %96 = vector.shape_cast %92 : vector<1x128xf32> to vector<1x1x128xf32>
      tpu.vector_store %arg10[%c0_62, %93, %c0_63], %96 {strides = array<i32>} : memref<1x8x128xf32, #tpu.memory_space<vmem>>, vector<1x1x128xf32>,
    }
    %c8_i32_0 = arith.constant 8 : i32
    return
  }
  func.func @transform_0(%arg0: i32) -> (i32, i32, i32, i32) {
    %c0_i32 = arith.constant 0 : i32
    %c0_i32_0 = arith.constant 0 : i32
    %c0_i32_1 = arith.constant 0 : i32
    %c0_i32_2 = arith.constant 0 : i32
    return %arg0, %c0_i32, %c0_i32_0, %c0_i32_1 : i32, i32, i32, i32
  }
  func.func @transform_1(%arg0: i32) -> (i32, i32) {
    %c0_i32 = arith.constant 0 : i32
    %c0_i32_0 = arith.constant 0 : i32
    %c0_i32_1 = arith.constant 0 : i32
    return %c0_i32, %c0_i32_0 : i32, i32
  }
  func.func @transform_2(%arg0: i32) -> (i32, i32) {
    %c0_i32 = arith.constant 0 : i32
    %c0_i32_0 = arith.constant 0 : i32
    %c0_i32_1 = arith.constant 0 : i32
    return %c0_i32, %c0_i32_0 : i32, i32
  }
  func.func @transform_3(%arg0: i32) -> (i32, i32) {
    %c0_i32 = arith.constant 0 : i32
    %c0_i32_0 = arith.constant 0 : i32
    %c0_i32_1 = arith.constant 0 : i32
    return %c0_i32, %c0_i32_0 : i32, i32
  }
  func.func @transform_4(%arg0: i32) -> (i32, i32) {
    %c0_i32 = arith.constant 0 : i32
    %c0_i32_0 = arith.constant 0 : i32
    %c0_i32_1 = arith.constant 0 : i32
    return %c0_i32, %c0_i32_0 : i32, i32
  }
  func.func @transform_5(%arg0: i32) -> (i32, i32) {
    %c0_i32 = arith.constant 0 : i32
    %c0_i32_0 = arith.constant 0 : i32
    %c0_i32_1 = arith.constant 0 : i32
    return %c0_i32, %c0_i32_0 : i32, i32
  }
  func.func @transform_6(%arg0: i32) -> (i32, i32) {
    %c0_i32 = arith.constant 0 : i32
    %c0_i32_0 = arith.constant 0 : i32
    %c0_i32_1 = arith.constant 0 : i32
    return %c0_i32, %c0_i32_0 : i32, i32
  }
  func.func @transform_7(%arg0: i32) -> (i32, i32) {
    %c0_i32 = arith.constant 0 : i32
    %c0_i32_0 = arith.constant 0 : i32
    %c0_i32_1 = arith.constant 0 : i32
    return %c0_i32, %c0_i32_0 : i32, i32
  }
  func.func @transform_8(%arg0: i32) -> (i32, i32) {
    %c0_i32 = arith.constant 0 : i32
    %c0_i32_0 = arith.constant 0 : i32
    %c0_i32_1 = arith.constant 0 : i32
    return %c0_i32, %c0_i32_0 : i32, i32
  }
  func.func @transform_9(%arg0: i32) -> (i32, i32, i32) {
    %c0_i32 = arith.constant 0 : i32
    %c0_i32_0 = arith.constant 0 : i32
    %c0_i32_1 = arith.constant 0 : i32
    return %arg0, %c0_i32, %c0_i32_0 : i32, i32, i32
  }
}

</mosaic_0001>

<bundles_post_ra>
// kernel: mnist_cnn_forward.1
= control target key start
LH: loop header
LB: loop body
LE: loop exit
PB: predicated region body
PF: predicated region fallthrough
CT: control target
= control target key end

     0   :  { %s5114_s30 = smov 0   ;;  %s5983_s0 = inlined_call_operand.vmem [shape: bf16[1,8,196,128], index: 0, kind: input, shape index: {}]   ;;  %s5984_s1 = inlined_call_operand.vmem [shape: bf16[128,128], index: 1, kind: input, shape index: {}]   ;;  %s5985_s2 = inlined_call_operand.vmem [shape: f32[1,128], index: 2, kind: input, shape index: {}]   ;;  %s5986_s3 = inlined_call_operand.vmem [shape: bf16[504,196], index: 3, kind: input, shape index: {}]   ;;  %s5987_s4 = inlined_call_operand.vmem [shape: bf16[1152,128], index: 4, kind: input, shape index: {}]   ;;  %s5988_s5 = inlined_call_operand.vmem [shape: f32[1,128], index: 5, kind: input, shape index: {}]   ;;  %s5989_s6 = inlined_call_operand.vmem [shape: bf16[144,56], index: 6, kind: input, shape index: {}]   ;;  %s5990_s7 = inlined_call_operand.vmem [shape: bf16[1152,128], index: 7, kind: input, shape index: {}]   ;;  %s5991_s8 = inlined_call_operand.vmem [shape: f32[1,128], index: 8, kind: input, shape index: {}]   ;;  %s5992_s9 = inlined_call_operand.vmem [shape: f32[1,8,128], index: 9, kind: output, shape index: {}]  }
   0x1 LB: > { %v4735_v0 = vld [vmem:[%s5984_s1] sm:$0xff]   ;;  %v5061_v1 = vmov 0.0   ;;  %v4736_v2 = vld [vmem:[%s5984_s1 + $0x8] sm:$0xff]   ;;  %vm5062_vm0 = vmmov 0   ;;  %s4136_s14 = smul.u32 100, %s5059_s30  ;;  %v4737_v3 = vld [vmem:[%s5984_s1 + $0x10] sm:$0xff]   ;;  %s3713_s10 = scalar_lea.vmem %s5992_s9, %s5059_s30  ;;  %s5059_s30 = sphi %s5114_s30, %s38_s30  }
   0x2   : > { %4568 = vmatprep.subr.bf16.mxu0 %v5061_v1  ;;  %4584 = vmatprep.mubr.msk.bf16.mxu0 %vm5062_vm0, %v5061_v1  ;;  %v4738_v4 = vld [vmem:[%s5984_s1 + $0x18] sm:$0xff]   ;;  %v4739_v5 = vld [vmem:[%s5984_s1 + $0x20] sm:$0xff]   ;;  %v4740_v6 = vld [vmem:[%s5984_s1 + $0x28] sm:$0xff]   ;;  %v5063_v22 = vmov 0   ;;  %vm736_vm1 = vcmask 556032   ;;  %vm833_vm2 = vcmask 1041408  }
   0x3   : > { %4569 = vmatpush3.bf16.msra.mxu0 %v4735_v0  ;;  %s5137_s19 = scalar_lea.vmem %s5983_s0, %s4136_s14  ;;  %v4741_v7 = vld [vmem:[%s5984_s1 + $0x30] sm:$0xff]   ;;  %v4742_v8 = vld [vmem:[%s5984_s1 + $0x38] sm:$0xff]   ;;  %837 = vmatprep.subr.bf16.mxu1 %v5063_v22  ;;  %v4758_v23 = vld [vmem:[%s5986_s3 + $0x4] ss:$8 sps:$4 sm:$0xff]   ;;  %vm2659_vm3 = vcmask 1043456   ;;  %vm2631_vm4 = vcmask 457728  }
   0x4   : > { %4570 = vmatprep.subr.bf16.mxu0 %v5061_v1  ;;  %v4743_v9 = vld [vmem:[%s5137_s19] sm:$0xff]   ;;  %v4744_v10 = vld [vmem:[%s5137_s19 + $0x8] sm:$0xff]   ;;  %v4745_v11 = vld [vmem:[%s5137_s19 + $0x10] sm:$0xff]   ;;  %3814 = vmatprep.mubr.msk.bf16.mxu1 %vm736_vm1, %v4758_v23  ;;  %s38_s30 = sadd.s32 1, %s5059_s30  }
   0x5   : > { %v4746_v12 = vld [vmem:[%s5137_s19 + $0x18] sm:$0xff]   ;;  %v4747_v13 = vld [vmem:[%s5137_s19 + $0x20] sm:$0xff]   ;;  %v4748_v14 = vld [vmem:[%s5137_s19 + $0x28] sm:$0xff]   ;;  %p35_p0 = scmp.ge.s32.totalorder %s38_s30, 8  }
   0x6   : > { %v4749_v15 = vld [vmem:[%s5137_s19 + $0x30] sm:$0xff]   ;;  %v4750_v16 = vld [vmem:[%s5137_s19 + $0x38] sm:$0xff]   ;;  %v4751_v17 = vld [vmem:[%s5137_s19 + $0x40] sm:$0xff]  }
   0x7   : > { %4571 = vmatpush3.bf16.msra.mxu0 %v4736_v2  ;;  %v4752_v18 = vld [vmem:[%s5137_s19 + $0x48] sm:$0xff]   ;;  %v4753_v19 = vld [vmem:[%s5137_s19 + $0x50] sm:$0xff]   ;;  %v4754_v20 = vld [vmem:[%s5137_s19 + $0x58] sm:$0xff]  }
   0x8   : > { %4572 = vmatprep.subr.bf16.mxu0 %v5061_v1  ;;  %v4755_v21 = vld [vmem:[%s5137_s19 + $0x60] ss:$0 sps:$4 sm:$0x33]  }
   0x9   : > { %v5204_v24 = vld [vmem:[%s5985_s2] ss:$0 sm:$0xff] }
   0xb   : > { %4573 = vmatpush3.bf16.msra.mxu0 %v4737_v3 }
   0xc   : > { %4574 = vmatprep.subr.bf16.mxu0 %v5061_v1 }
   0xf   : > { %4575 = vmatpush3.bf16.msra.mxu0 %v4738_v4 }
  0x10   : > { %4576 = vmatprep.subr.bf16.mxu0 %v5061_v1 }
  0x13   : > { %4577 = vmatpush3.bf16.msra.mxu0 %v4739_v5 }
  0x14   : > { %4578 = vmatprep.subr.bf16.mxu0 %v5061_v1 }
  0x17   : > { %4579 = vmatpush3.bf16.msra.mxu0 %v4740_v6 }
  0x18   : > { %4580 = vmatprep.subr.bf16.mxu0 %v5061_v1 }
  0x1b   : > { %4581 = vmatpush3.bf16.msra.mxu0 %v4741_v7 }
  0x1c   : > { %4582 = vmatprep.subr.bf16.mxu0 %v5061_v1 }
  0x1f   : > { %4583 = vmatpush3.bf16.msra.mxu0 %v4742_v8 }
  0x22   : > { %4585 = vmatmul.mubr.bf16.vlgmr.msra.gmra.mrb[0].mxu0 %v4743_v9 }
  0x23   : > { %4588 = vmatprep.mubr.msk.bf16.mxu0 %vm5062_vm0, %v5061_v1 }
  0x2a   : > { %4589 = vmatmul.mubr.bf16.gmra.mrb[4].mxu0 %v4744_v10 }
  0x2b   : > { %4592 = vmatprep.mubr.msk.bf16.mxu0 %vm5062_vm0, %v5061_v1 }
  0x32   : > { %4593 = vmatmul.mubr.bf16.gmra.mrb[8].mxu0 %v4745_v11 }
  0x33   : > { %4596 = vmatprep.mubr.msk.bf16.mxu0 %vm5062_vm0, %v5061_v1 }
  0x3a   : > { %4597 = vmatmul.mubr.bf16.gmra.mrb[12].mxu0 %v4746_v12 }
  0x3b   : > { %4600 = vmatprep.mubr.msk.bf16.mxu0 %vm5062_vm0, %v5061_v1 }
  0x42   : > { %4601 = vmatmul.mubr.bf16.gmra.mrb[16].mxu0 %v4747_v13 }
  0x43   : > { %4604 = vmatprep.mubr.msk.bf16.mxu0 %vm5062_vm0, %v5061_v1 }
  0x4a   : > { %4605 = vmatmul.mubr.bf16.gmra.mrb[20].mxu0 %v4748_v14 }
  0x4b   : > { %4608 = vmatprep.mubr.msk.bf16.mxu0 %vm5062_vm0, %v5061_v1 }
  0x52   : > { %4609 = vmatmul.mubr.bf16.gmra.mrb[24].mxu0 %v4749_v15 }
  0x53   : > { %4612 = vmatprep.mubr.msk.bf16.mxu0 %vm5062_vm0, %v5061_v1 }
  0x5a   : > { %4613 = vmatmul.mubr.bf16.gmra.mrb[28].mxu0 %v4750_v16 }
  0x5b   : > { %4616 = vmatprep.mubr.msk.bf16.mxu0 %vm5062_vm0, %v5061_v1 }
  0x62   : > { %4617 = vmatmul.mubr.bf16.gmra.mrb[32].mxu0 %v4751_v17 }
  0x63   : > { %4620 = vmatprep.mubr.msk.bf16.mxu0 %vm5062_vm0, %v5061_v1 }
  0x6a   : > { %4621 = vmatmul.mubr.bf16.gmra.mrb[36].mxu0 %v4752_v18 }
  0x6b   : > { %4624 = vmatprep.mubr.msk.bf16.mxu0 %vm5062_vm0, %v5061_v1 }
  0x72   : > { %4625 = vmatmul.mubr.bf16.gmra.mrb[40].mxu0 %v4753_v19 }
  0x73   : > { %4628 = vmatprep.mubr.msk.bf16.mxu0 %vm5062_vm0, %v5061_v1 }
  0x7a   : > { %4629 = vmatmul.mubr.bf16.gmra.mrb[44].mxu0 %v4754_v20 }
  0x7b   : > { %4632 = vmatprep.mubr.msk.bf16.mxu0 %vm5062_vm0, %v5061_v1 }
  0x82   : > { %4633 = vmatmul.mubr.bf16.gmra.mrb[48].mxu0 %v4755_v21 }
  0xf5   : > { %v248_v25 = vpop.f32.mrb[0].mxu0 }
  0xf6   : > { %v249_v26 = vadd.f32 %v5204_v24, %v248_v25  ;;  %v4586_v27 = vpop.f32.mrb[1].mxu0 }
  0xf7   : > { %v251_v28 = vpop.f32.mrb[2].mxu0 }
  0xf8   : > { %v252_v29 = vadd.f32 %v5204_v24, %v251_v28  ;;  %v4587_v30 = vpop.f32.mrb[3].mxu0  ;;  %v350_v31 = vmax.f32 %v249_v26, 0.0 }
  0xfa   : > { %v351_v32 = vmax.f32 %v252_v29, 0.0 }
  0xfc   : > { %v438_v33 = vpack.c.bf16 %v351_v32, %v350_v31 }
  0xfd   : > { %v256_v34 = vpop.f32.mrb[4].mxu0 }
  0xfe   : > { %v257_v35 = vadd.f32 %v5204_v24, %v256_v34  ;;  %v4590_v36 = vpop.f32.mrb[5].mxu0  ;;  %838 = vmatpush1.bf16.msra.mxu1 %v438_v33 }
  0xff   : > { %v259_v37 = vpop.f32.mrb[6].mxu0  ;;  %839 = vmatprep.subr.bf16.mxu1 %v5063_v22 }
 0x100   : > { %v260_v38 = vadd.f32 %v5204_v24, %v259_v37  ;;  %v4591_v39 = vpop.f32.mrb[7].mxu0  ;;  %v352_v40 = vmax.f32 %v257_v35, 0.0 }
 0x102   : > { %v353_v41 = vmax.f32 %v260_v38, 0.0 }
 0x104   : > { %v439_v42 = vpack.c.bf16 %v353_v41, %v352_v40 }
 0x105   : > { %v264_v43 = vpop.f32.mrb[8].mxu0 }
 0x106   : > { %v265_v44 = vadd.f32 %v5204_v24, %v264_v43  ;;  %v4594_v45 = vpop.f32.mrb[9].mxu0  ;;  %840 = vmatpush1.bf16.msra.mxu1 %v439_v42 }
 0x107   : > { %v267_v46 = vpop.f32.mrb[10].mxu0  ;;  %841 = vmatprep.subr.bf16.mxu1 %v5063_v22 }
 0x108   : > { %v268_v47 = vadd.f32 %v5204_v24, %v267_v46  ;;  %v4595_v48 = vpop.f32.mrb[11].mxu0  ;;  %v354_v49 = vmax.f32 %v265_v44, 0.0 }
 0x10a   : > { %v355_v50 = vmax.f32 %v268_v47, 0.0 }
 0x10c   : > { %v440_v51 = vpack.c.bf16 %v355_v50, %v354_v49 }
 0x10d   : > { %v272_v52 = vpop.f32.mrb[12].mxu0 }
 0x10e   : > { %v273_v53 = vadd.f32 %v5204_v24, %v272_v52  ;;  %v4598_v54 = vpop.f32.mrb[13].mxu0  ;;  %842 = vmatpush1.bf16.msra.mxu1 %v440_v51 }
 0x10f   : > { %v275_v55 = vpop.f32.mrb[14].mxu0  ;;  %843 = vmatprep.subr.bf16.mxu1 %v5063_v22 }
 0x110   : > { %v276_v56 = vadd.f32 %v5204_v24, %v275_v55  ;;  %v4599_v57 = vpop.f32.mrb[15].mxu0  ;;  %v356_v58 = vmax.f32 %v273_v53, 0.0 }
 0x112   : > { %v357_v59 = vmax.f32 %v276_v56, 0.0 }
 0x114   : > { %v441_v60 = vpack.c.bf16 %v357_v59, %v356_v58 }
 0x115   : > { %v280_v61 = vpop.f32.mrb[16].mxu0 }
 0x116   : > { %v281_v62 = vadd.f32 %v5204_v24, %v280_v61  ;;  %v4602_v63 = vpop.f32.mrb[17].mxu0  ;;  %844 = vmatpush1.bf16.msra.mxu1 %v441_v60 }
 0x117   : > { %v283_v0 = vpop.f32.mrb[18].mxu0  ;;  %845 = vmatprep.subr.bf16.mxu1 %v5063_v22 }
 0x118   : > { %v284_v2 = vadd.f32 %v5204_v24, %v283_v0  ;;  %v4603_v3 = vpop.f32.mrb[19].mxu0  ;;  %v358_v4 = vmax.f32 %v281_v62, 0.0 }
 0x11a   : > { %v359_v5 = vmax.f32 %v284_v2, 0.0 }
 0x11c   : > { %v442_v6 = vpack.c.bf16 %v359_v5, %v358_v4 }
 0x11d   : > { %v288_v7 = vpop.f32.mrb[20].mxu0 }
 0x11e   : > { %v289_v8 = vadd.f32 %v5204_v24, %v288_v7  ;;  %v4606_v9 = vpop.f32.mrb[21].mxu0  ;;  %846 = vmatpush1.bf16.msra.mxu1 %v442_v6 }
 0x11f   : > { %v291_v10 = vpop.f32.mrb[22].mxu0  ;;  %847 = vmatprep.subr.bf16.mxu1 %v5063_v22 }
 0x120   : > { %v292_v11 = vadd.f32 %v5204_v24, %v291_v10  ;;  %v4607_v12 = vpop.f32.mrb[23].mxu0  ;;  %v360_v13 = vmax.f32 %v289_v8, 0.0 }
 0x122   : > { %v361_v14 = vmax.f32 %v292_v11, 0.0 }
 0x124   : > { %v443_v15 = vpack.c.bf16 %v361_v14, %v360_v13 }
 0x125   : > { %v296_v16 = vpop.f32.mrb[24].mxu0 }
 0x126   : > { %v297_v17 = vadd.f32 %v5204_v24, %v296_v16  ;;  %v4610_v18 = vpop.f32.mrb[25].mxu0  ;;  %848 = vmatpush1.bf16.msra.mxu1 %v443_v15 }
 0x127   : > { %v299_v19 = vpop.f32.mrb[26].mxu0  ;;  %849 = vmatprep.subr.bf16.mxu1 %v5063_v22  ;;  %v4759_v18 = vld [vmem:[%s5986_s3 + $0x14] ss:$8 sps:$4 sm:$0xff]  }
 0x128   : > { %v300_v20 = vadd.f32 %v5204_v24, %v299_v19  ;;  %v4611_v21 = vpop.f32.mrb[27].mxu0  ;;  %v362_v23 = vmax.f32 %v297_v17, 0.0  ;;  %v4756_v17 = vld [vmem:[%s5986_s3] ss:$8 sps:$4 sm:$0xff]  }
 0x129   : > { %v4764_v19 = vld [vmem:[%s5986_s3 + $0x20] ss:$8 sps:$4 sm:$0xff]   ;;  %v4767_v21 = vld [vmem:[%s5986_s3 + $0x30] ss:$8 sps:$4 sm:$0xff]  }
 0x12a   : > { %v363_v25 = vmax.f32 %v300_v20, 0.0  ;;  %v4765_v20 = vld [vmem:[%s5986_s3 + $0x34] ss:$8 sps:$4 sm:$0xff]  }
 0x12c   : > { %v444_v26 = vpack.c.bf16 %v363_v25, %v362_v23  ;;  %v4768_v23 = vld [vmem:[%s5986_s3 + $0x44] ss:$8 sps:$4 sm:$0xff]   ;;  %v4770_v25 = vld [vmem:[%s5986_s3 + $0x40] ss:$8 sps:$4 sm:$0xff]  }
 0x12d   : > { %v304_v27 = vpop.f32.mrb[28].mxu0 }
 0x12e   : > { %v305_v28 = vadd.f32 %v5204_v24, %v304_v27  ;;  %v4614_v29 = vpop.f32.mrb[29].mxu0  ;;  %850 = vmatpush1.bf16.msra.mxu1 %v444_v26  ;;  %v4771_v26 = vld [vmem:[%s5986_s3 + $0x54] ss:$8 sps:$4 sm:$0xff]   ;;  %v4773_v27 = vld [vmem:[%s5986_s3 + $0x50] ss:$8 sps:$4 sm:$0xff]  }
 0x12f   : > { %v307_v30 = vpop.f32.mrb[30].mxu0  ;;  %851 = vmatprep.subr.bf16.mxu1 %v5063_v22  ;;  %v4776_v29 = vld [vmem:[%s5986_s3 + $0x60] ss:$8 sps:$4 sm:$0xff]  }
 0x130   : > { %v308_v31 = vadd.f32 %v5204_v24, %v307_v30  ;;  %v4615_v32 = vpop.f32.mrb[31].mxu0  ;;  %v364_v33 = vmax.f32 %v305_v28, 0.0  ;;  %v4774_v28 = vld [vmem:[%s5986_s3 + $0x64] ss:$8 sps:$4 sm:$0xff]   ;;  %v4777_v30 = vld [vmem:[%s5986_s3 + $0x74] ss:$8 sps:$4 sm:$0xff]  }
 0x131   : > { %v4780_v32 = vld [vmem:[%s5986_s3 + $0x84] ss:$8 sps:$4 sm:$0xff]  }
 0x132   : > { %v365_v34 = vmax.f32 %v308_v31, 0.0  ;;  %v4779_v31 = vld [vmem:[%s5986_s3 + $0x70] ss:$8 sps:$4 sm:$0xff]  }
 0x134   : > { %v445_v35 = vpack.c.bf16 %v365_v34, %v364_v33  ;;  %v4782_v33 = vld [vmem:[%s5986_s3 + $0x80] ss:$8 sps:$4 sm:$0xff]   ;;  %v4783_v34 = vld [vmem:[%s5986_s3 + $0x94] ss:$8 sps:$4 sm:$0xff]  }
 0x135   : > { %v312_v36 = vpop.f32.mrb[32].mxu0 }
 0x136   : > { %v313_v37 = vadd.f32 %v5204_v24, %v312_v36  ;;  %v4618_v38 = vpop.f32.mrb[33].mxu0  ;;  %852 = vmatpush1.bf16.msra.mxu1 %v445_v35  ;;  %v4785_v35 = vld [vmem:[%s5986_s3 + $0x90] ss:$8 sps:$4 sm:$0xff]   ;;  %v4786_v36 = vld [vmem:[%s5986_s3 + $0xa4] ss:$8 sps:$4 sm:$0xff]  }
 0x137   : > { %v315_v39 = vpop.f32.mrb[34].mxu0  ;;  %853 = vmatprep.subr.bf16.mxu1 %v5063_v22  ;;  %v4789_v38 = vld [vmem:[%s5986_s3 + $0xb4] ss:$8 sps:$4 sm:$0xff]  }
 0x138   : > { %v316_v40 = vadd.f32 %v5204_v24, %v315_v39  ;;  %v4619_v41 = vpop.f32.mrb[35].mxu0  ;;  %v366_v42 = vmax.f32 %v313_v37, 0.0  ;;  %v4788_v37 = vld [vmem:[%s5986_s3 + $0xa0] ss:$8 sps:$4 sm:$0xff]   ;;  %v4791_v39 = vld [vmem:[%s5986_s3 + $0xb0] ss:$8 sps:$4 sm:$0xff]  }
 0x139   : > { %v4794_v41 = vld [vmem:[%s5986_s3 + $0xc0] ss:$8 sps:$4 sm:$0xff]  }
 0x13a   : > { %v367_v43 = vmax.f32 %v316_v40, 0.0  ;;  %v4792_v40 = vld [vmem:[%s5986_s3 + $0xc4] ss:$8 sps:$4 sm:$0xff]  }
 0x13c   : > { %v446_v44 = vpack.c.bf16 %v367_v43, %v366_v42  ;;  %v4795_v42 = vld [vmem:[%s5986_s3 + $0xd4] ss:$8 sps:$4 sm:$0xff]   ;;  %v4843_v43 = vld [vmem:[%s5987_s4 + $0x40] sm:$0xff]  }
 0x13d   : > { %v320_v45 = vpop.f32.mrb[36].mxu0  ;;  %4286 = vmatprep.subr.bf16.mxu0 %v4843_v43 }
 0x13e   : > { %v321_v46 = vadd.f32 %v5204_v24, %v320_v45  ;;  %v4622_v47 = vpop.f32.mrb[37].mxu0  ;;  %854 = vmatpush1.bf16.msra.mxu1 %v446_v44  ;;  %v4844_v44 = vld [vmem:[%s5987_s4] sm:$0xff]   ;;  %v4845_v45 = vld [vmem:[%s5987_s4 + $0x48] sm:$0xff]  }
 0x13f   : > { %v323_v48 = vpop.f32.mrb[38].mxu0  ;;  %855 = vmatprep.subr.bf16.mxu1 %v5063_v22  ;;  %4287 = vmatpush3.bf16.msra.mxu0 %v4844_v44  ;;  %v4797_v47 = vld [vmem:[%s5986_s3 + $0xd0] ss:$8 sps:$4 sm:$0xff]  }
 0x140   : > { %v324_v49 = vadd.f32 %v5204_v24, %v323_v48  ;;  %v4623_v50 = vpop.f32.mrb[39].mxu0  ;;  %v368_v51 = vmax.f32 %v321_v46, 0.0  ;;  %v4846_v46 = vld [vmem:[%s5987_s4 + $0x8] sm:$0xff]   ;;  %4288 = vmatprep.subr.bf16.mxu0 %v4845_v45  ;;  %v4849_v44 = vld [vmem:[%s5986_s3 + $0x1d0] ss:$8 sps:$4 sm:$0xff]  }
 0x141   : > { %v4798_v48 = vld [vmem:[%s5986_s3 + $0xe4] ss:$8 sps:$4 sm:$0xff]   ;;  %v4851_v50 = vld [vmem:[%s5987_s4 + $0x10] sm:$0xff]  }
 0x142   : > { %v369_v52 = vmax.f32 %v324_v49, 0.0  ;;  %v4850_v49 = vld [vmem:[%s5987_s4 + $0x50] sm:$0xff]  }
 0x143   : > { %4289 = vmatpush3.bf16.msra.mxu0 %v4846_v46  ;;  %v4854_v46 = vld [vmem:[%s5986_s3 + $0x1e4] ss:$8 sps:$4 sm:$0xff]  }
 0x144   : > { %v447_v53 = vpack.c.bf16 %v369_v52, %v368_v51  ;;  %4290 = vmatprep.subr.bf16.mxu0 %v4850_v49  ;;  %v4852_v51 = vld [vmem:[%s5987_s4 + $0x58] sm:$0xff]   ;;  %v437_v49 = vld [vmem:[%s5986_s3 + $0x1f0] sm:$0xff] }
 0x145   : > { %v328_v54 = vpop.f32.mrb[40].mxu0  ;;  %v4853_v52 = vld [vmem:[%s5987_s4 + $0x18] sm:$0xff]  }
 0x146   : > { %v329_v55 = vadd.f32 %v5204_v24, %v328_v54  ;;  %v4626_v56 = vpop.f32.mrb[41].mxu0  ;;  %856 = vmatpush1.bf16.msra.mxu1 %v447_v53  ;;  %v4800_v53 = vld [vmem:[%s5986_s3 + $0xe0] ss:$8 sps:$4 sm:$0xff]   ;;  %v4801_v54 = vld [vmem:[%s5986_s3 + $0xf4] ss:$8 sps:$4 sm:$0xff]  }
 0x147   : > { %v331_v57 = vpop.f32.mrb[42].mxu0  ;;  %857 = vmatprep.subr.bf16.mxu1 %v5063_v22  ;;  %4291 = vmatpush3.bf16.msra.mxu0 %v4851_v50  ;;  %v4858_v56 = vld [vmem:[%s5987_s4 + $0x20] sm:$0xff]  }
 0x148   : > { %v332_v58 = vadd.f32 %v5204_v24, %v331_v57  ;;  %v4627_v59 = vpop.f32.mrb[43].mxu0  ;;  %v370_v60 = vmax.f32 %v329_v55, 0.0  ;;  %4292 = vmatprep.subr.bf16.mxu0 %v4852_v51  ;;  %v4857_v55 = vld [vmem:[%s5987_s4 + $0x60] sm:$0xff]   ;;  %v4859_v57 = vld [vmem:[%s5987_s4 + $0x68] sm:$0xff]  }
 0x149   : > { %v4803_v59 = vld [vmem:[%s5986_s3 + $0xf0] ss:$8 sps:$4 sm:$0xff]  }
 0x14a   : > { %v371_v61 = vmax.f32 %v332_v58, 0.0  ;;  %v4860_v58 = vld [vmem:[%s5987_s4 + $0x28] sm:$0xff]  }
 0x14b   : > { %4293 = vmatpush3.bf16.msra.mxu0 %v4853_v52 }
 0x14c   : > { %v448_v62 = vpack.c.bf16 %v371_v61, %v370_v60  ;;  %4294 = vmatprep.subr.bf16.mxu0 %v4857_v55  ;;  %v4804_v60 = vld [vmem:[%s5986_s3 + $0x104] ss:$8 sps:$4 sm:$0xff]   ;;  %v4863_v61 = vld [vmem:[%s5987_s4 + $0x70] sm:$0xff]   ;;  %v3813_v55 = vcombine.high %v437_v49, %v437_v49 }
 0x14d   : > { %v336_v63 = vpop.f32.mrb[44].mxu0 }
 0x14e   : > { %v337_v0 = vadd.f32 %v5204_v24, %v336_v63  ;;  %v4630_v2 = vpop.f32.mrb[45].mxu0  ;;  %858 = vmatpush1.bf16.msra.mxu1 %v448_v62  ;;  %v4864_v62 = vld [vmem:[%s5987_s4 + $0x30] sm:$0xff]   ;;  %v4865_v63 = vld [vmem:[%s5987_s4 + $0x78] sm:$0xff]  }
 0x14f   : > { %v339_v3 = vpop.f32.mrb[46].mxu0  ;;  %859 = vmatprep.subr.bf16.mxu1 %v5063_v22  ;;  %4295 = vmatpush3.bf16.msra.mxu0 %v4858_v56  ;;  %v4806_v2 = vld [vmem:[%s5986_s3 + $0x100] ss:$8 sps:$4 sm:$0xff]  }
 0x150   : > { %v340_v4 = vadd.f32 %v5204_v24, %v339_v3  ;;  %v4631_v5 = vpop.f32.mrb[47].mxu0  ;;  %v372_v6 = vmax.f32 %v337_v0, 0.0  ;;  %4296 = vmatprep.subr.bf16.mxu0 %v4859_v57  ;;  %v4866_v0 = vld [vmem:[%s5987_s4 + $0x38] sm:$0xff]  }
 0x151   : > { %v4807_v3 = vld [vmem:[%s5986_s3 + $0x114] ss:$8 sps:$4 sm:$0xff]   ;;  %v4810_v5 = vld [vmem:[%s5986_s3 + $0x124] ss:$8 sps:$4 sm:$0xff]  }
 0x152   : > { %v373_v7 = vmax.f32 %v340_v4, 0.0  ;;  %v4809_v4 = vld [vmem:[%s5986_s3 + $0x110] ss:$8 sps:$4 sm:$0xff]  }
 0x153   : > { %4297 = vmatpush3.bf16.msra.mxu0 %v4860_v58 }
 0x154   : > { %v449_v8 = vpack.c.bf16 %v373_v7, %v372_v6  ;;  %4298 = vmatprep.subr.bf16.mxu0 %v4863_v61  ;;  %v4812_v6 = vld [vmem:[%s5986_s3 + $0x120] ss:$8 sps:$4 sm:$0xff]   ;;  %v4813_v7 = vld [vmem:[%s5986_s3 + $0x134] ss:$8 sps:$4 sm:$0xff]   ;;  %v3812_v61 = vcombine.low %v437_v49, %v437_v49 }
 0x155   : > { %v344_v9 = vpop.f32.mrb[48].mxu0  ;;  %v4893_v49 = vld [vmem:[%s5987_s4 + $0xb8] sm:$0xff]  }
 0x156   : > { %v345_v10 = vadd.f32 %v5204_v24, %v344_v9  ;;  %v4634_v11 = vpop.f32.mrb[49].mxu0  ;;  %860 = vmatpush1.bf16.msra.mxu1 %v449_v8  ;;  %v4762_v24 = vld [vmem:[%s5986_s3 + $0x24] ss:$8 sps:$4 sm:$0xff]   ;;  %v4815_v8 = vld [vmem:[%s5986_s3 + $0x130] ss:$8 sps:$4 sm:$0xff]  }
 0x157   : > { %v347_v12 = vpop.f32.mrb[50].mxu0  ;;  %861 = vmatprep.subr.bf16.mxu1 %v5063_v22  ;;  %v4761_v22 = vld [vmem:[%s5986_s3 + $0x10] ss:$8 sps:$4 sm:$0xff]   ;;  %4299 = vmatpush3.bf16.msra.mxu0 %v4864_v62  ;;  %v4816_v9 = vld [vmem:[%s5986_s3 + $0x144] ss:$8 sps:$4 sm:$0xff]  }
 0x158   : > { %v374_v13 = vmax.f32 %v345_v10, 0.0  ;;  %v4635_v14 = vpop.f32.mrb[51].mxu0  ;;  %4300 = vmatprep.subr.bf16.mxu0 %v4865_v63  ;;  %v4878_v10 = vld [vmem:[%s5987_s4 + $0xc0] sm:$0xff]   ;;  %v4819_v12 = vld [vmem:[%s5986_s3 + $0x154] ss:$8 sps:$4 sm:$0xff]  }
 0x159   : > { %v4818_v11 = vld [vmem:[%s5986_s3 + $0x140] ss:$8 sps:$4 sm:$0xff]   ;;  %v4822_v14 = vld [vmem:[%s5986_s3 + $0x164] ss:$8 sps:$4 sm:$0xff]  }
 0x15a   : > { %v450_v15 = vpack.c.bf16 %v374_v13, %v374_v13  ;;  %v4821_v13 = vld [vmem:[%s5986_s3 + $0x150] ss:$8 sps:$4 sm:$0xff]  }
 0x15b   : > { %4301 = vmatpush3.bf16.msra.mxu0 %v4866_v0 }
 0x15c   : > { %v835_v16 = vsel %vm833_vm2, %v450_v15, 0  ;;  %4326 = vmatprep.subr.bf16.mxu0 %v4878_v10  ;;  %v4824_v15 = vld [vmem:[%s5986_s3 + $0x160] ss:$8 sps:$4 sm:$0xff]  }
 0x15d   : > { %862 = vmatpush1.bf16.msra.mxu1 %v835_v16  ;;  %v4825_v16 = vld [vmem:[%s5986_s3 + $0x174] ss:$8 sps:$4 sm:$0xff]  }
 0x160   : > { %870 = vmatmul.mubr.bf16.vlgmr.msra.gmra.mrb[0].mxu1 %v4756_v17  ;;  %v4827_v17 = vld [vmem:[%s5986_s3 + $0x170] ss:$8 sps:$4 sm:$0xff]  }
 0x161   : > { %3815 = vmatprep.mubr.msk.bf16.mxu1 %vm736_vm1, %v4759_v18  ;;  %v4828_v18 = vld [vmem:[%s5986_s3 + $0x184] ss:$8 sps:$4 sm:$0xff]  }
 0x168   : > { %878 = vmatmul.mubr.bf16.gmra.mrb[4].mxu1 %v4761_v22  ;;  %v4830_v22 = vld [vmem:[%s5986_s3 + $0x180] ss:$8 sps:$4 sm:$0xff]  }
 0x169   : > { %3816 = vmatprep.mubr.msk.bf16.mxu1 %vm736_vm1, %v4762_v24  ;;  %v4831_v24 = vld [vmem:[%s5986_s3 + $0x194] ss:$8 sps:$4 sm:$0xff]  }
 0x170   : > { %886 = vmatmul.mubr.bf16.gmra.mrb[8].mxu1 %v4764_v19  ;;  %v4833_v19 = vld [vmem:[%s5986_s3 + $0x190] ss:$8 sps:$4 sm:$0xff]  }
 0x171   : > { %3817 = vmatprep.mubr.msk.bf16.mxu1 %vm736_vm1, %v4765_v20  ;;  %v4834_v20 = vld [vmem:[%s5986_s3 + $0x1a4] ss:$8 sps:$4 sm:$0xff]  }
 0x178   : > { %894 = vmatmul.mubr.bf16.gmra.mrb[12].mxu1 %v4767_v21  ;;  %v4836_v21 = vld [vmem:[%s5986_s3 + $0x1a0] ss:$8 sps:$4 sm:$0xff]  }
 0x179   : > { %3818 = vmatprep.mubr.msk.bf16.mxu1 %vm736_vm1, %v4768_v23  ;;  %v4837_v23 = vld [vmem:[%s5986_s3 + $0x1b4] ss:$8 sps:$4 sm:$0xff]  }
 0x180   : > { %902 = vmatmul.mubr.bf16.gmra.mrb[16].mxu1 %v4770_v25 }
 0x181   : > { %3819 = vmatprep.mubr.msk.bf16.mxu1 %vm736_vm1, %v4771_v26 }
 0x188   : > { %910 = vmatmul.mubr.bf16.gmra.mrb[20].mxu1 %v4773_v27 }
 0x189   : > { %3820 = vmatprep.mubr.msk.bf16.mxu1 %vm736_vm1, %v4774_v28  ;;  %v4839_v28 = vld [vmem:[%s5986_s3 + $0x1b0] ss:$8 sps:$4 sm:$0xff]  }
 0x190   : > { %918 = vmatmul.mubr.bf16.gmra.mrb[24].mxu1 %v4776_v29 }
 0x191   : > { %3821 = vmatprep.mubr.msk.bf16.mxu1 %vm736_vm1, %v4777_v30  ;;  %v4840_v30 = vld [vmem:[%s5986_s3 + $0x1c4] ss:$8 sps:$4 sm:$0xff]  }
 0x198   : > { %926 = vmatmul.mubr.bf16.gmra.mrb[28].mxu1 %v4779_v31 }
 0x199   : > { %3822 = vmatprep.mubr.msk.bf16.mxu1 %vm736_vm1, %v4780_v32 }
 0x1a0   : > { %934 = vmatmul.mubr.bf16.gmra.mrb[32].mxu1 %v4782_v33 }
 0x1a1   : > { %3823 = vmatprep.mubr.msk.bf16.mxu1 %vm736_vm1, %v4783_v34 }
 0x1a8   : > { %942 = vmatmul.mubr.bf16.gmra.mrb[36].mxu1 %v4785_v35 }
 0x1a9   : > { %3824 = vmatprep.mubr.msk.bf16.mxu1 %vm736_vm1, %v4786_v36  ;;  %v4842_v36 = vld [vmem:[%s5986_s3 + $0x1c0] ss:$8 sps:$4 sm:$0xff]  }
 0x1b0   : > { %950 = vmatmul.mubr.bf16.gmra.mrb[40].mxu1 %v4788_v37 }
 0x1b1   : > { %3825 = vmatprep.mubr.msk.bf16.mxu1 %vm736_vm1, %v4789_v38  ;;  %v4847_v38 = vld [vmem:[%s5986_s3 + $0x1d4] ss:$8 sps:$4 sm:$0xff]  }
 0x1b8   : > { %958 = vmatmul.mubr.bf16.gmra.mrb[44].mxu1 %v4791_v39 }
 0x1b9   : > { %3826 = vmatprep.mubr.msk.bf16.mxu1 %vm736_vm1, %v4792_v40 }
 0x1c0   : > { %966 = vmatmul.mubr.bf16.gmra.mrb[48].mxu1 %v4794_v41 }
 0x1c1   : > { %3827 = vmatprep.mubr.msk.bf16.mxu1 %vm736_vm1, %v4795_v42 }
 0x1c8   : > { %974 = vmatmul.mubr.bf16.gmra.mrb[52].mxu1 %v4797_v47 }
 0x1c9   : > { %3828 = vmatprep.mubr.msk.bf16.mxu1 %vm736_vm1, %v4798_v48 }
 0x1d0   : > { %982 = vmatmul.mubr.bf16.gmra.mrb[56].mxu1 %v4800_v53  ;;  %v4856_v53 = vld [vmem:[%s5986_s3 + $0x1e0] ss:$8 sps:$4 sm:$0xff]  }
 0x1d1   : > { %3829 = vmatprep.mubr.msk.bf16.mxu1 %vm736_vm1, %v4801_v54 }
 0x1d8   : > { %990 = vmatmul.mubr.bf16.gmra.mrb[60].mxu1 %v4803_v59 }
 0x1d9   : > { %3830 = vmatprep.mubr.msk.bf16.mxu1 %vm736_vm1, %v4804_v60 }
 0x1e0   : > { %998 = vmatmul.mubr.bf16.gmra.mrb[64].mxu1 %v4806_v2 }
 0x1e1   : > { %3831 = vmatprep.mubr.msk.bf16.mxu1 %vm736_vm1, %v4807_v3 }
 0x1e8   : > { %1006 = vmatmul.mubr.bf16.gmra.mrb[68].mxu1 %v4809_v4 }
 0x1e9   : > { %3832 = vmatprep.mubr.msk.bf16.mxu1 %vm736_vm1, %v4810_v5  ;;  %v4879_v5 = vld [vmem:[%s5987_s4 + $0x80] sm:$0xff]  }
 0x1f0   : > { %1014 = vmatmul.mubr.bf16.gmra.mrb[72].mxu1 %v4812_v6 }
 0x1f1   : > { %3833 = vmatprep.mubr.msk.bf16.mxu1 %vm736_vm1, %v4813_v7 }
 0x1f8   : > { %1022 = vmatmul.mubr.bf16.gmra.mrb[76].mxu1 %v4815_v8 }
 0x1f9   : > { %3834 = vmatprep.mubr.msk.bf16.mxu1 %vm736_vm1, %v4816_v9 }
 0x200   : > { %1030 = vmatmul.mubr.bf16.gmra.mrb[80].mxu1 %v4818_v11  ;;  %v4880_v11 = vld [vmem:[%s5987_s4 + $0xc8] sm:$0xff]  }
 0x201   : > { %3835 = vmatprep.mubr.msk.bf16.mxu1 %vm736_vm1, %v4819_v12  ;;  %v4881_v12 = vld [vmem:[%s5987_s4 + $0x88] sm:$0xff]  }
 0x208   : > { %1038 = vmatmul.mubr.bf16.gmra.mrb[84].mxu1 %v4821_v13  ;;  %v4882_v13 = vld [vmem:[%s5987_s4 + $0xd0] sm:$0xff]  }
 0x209   : > { %3836 = vmatprep.mubr.msk.bf16.mxu1 %vm736_vm1, %v4822_v14 }
 0x210   : > { %1046 = vmatmul.mubr.bf16.gmra.mrb[88].mxu1 %v4824_v15 }
 0x211   : > { %3837 = vmatprep.mubr.msk.bf16.mxu1 %vm736_vm1, %v4825_v16 }
 0x218   : > { %1054 = vmatmul.mubr.bf16.gmra.mrb[92].mxu1 %v4827_v17  ;;  %v4883_v17 = vld [vmem:[%s5987_s4 + $0x90] sm:$0xff]  }
 0x219   : > { %3838 = vmatprep.mubr.msk.bf16.mxu1 %vm736_vm1, %v4828_v18 }
 0x220   : > { %1062 = vmatmul.mubr.bf16.gmra.mrb[96].mxu1 %v4830_v22 }
 0x221   : > { %3839 = vmatprep.mubr.msk.bf16.mxu1 %vm736_vm1, %v4831_v24 }
 0x228   : > { %1070 = vmatmul.mubr.bf16.gmra.mrb[100].mxu1 %v4833_v19 }
 0x229   : > { %3840 = vmatprep.mubr.msk.bf16.mxu1 %vm736_vm1, %v4834_v20 }
 0x230   : > { %1078 = vmatmul.mubr.bf16.gmra.mrb[104].mxu1 %v4836_v21  ;;  %v4884_v21 = vld [vmem:[%s5987_s4 + $0xd8] sm:$0xff]  }
 0x231   : > { %3841 = vmatprep.mubr.msk.bf16.mxu1 %vm736_vm1, %v4837_v23  ;;  %v4885_v23 = vld [vmem:[%s5987_s4 + $0x98] sm:$0xff]  }
 0x233   : > { %v871_v25 = vpop.f32.mrb[0].mxu1 }
 0x234   : > { %v4137_v26 = vpack.c.bf16 %v871_v25, %v871_v25  ;;  %v873_v27 = vpop.f32.mrb[1].mxu1  ;;  %v4886_v25 = vld [vmem:[%s5987_s4 + $0xe0] sm:$0xff]  }
 0x235   : > { %v874_v29 = vpop.f32.mrb[2].mxu1 }
 0x236   : > { %1154 = vst [vmem:[#allocation2] sm:$0xf] %v4137_v26  ;;  %v4138_v31 = vpack.c.bf16 %v874_v29, %v874_v29  ;;  %v876_v32 = vpop.f32.mrb[3].mxu1  ;;  %v4887_v29 = vld [vmem:[%s5987_s4 + $0xa0] sm:$0xff]  }
 0x238   : > { %1155 = vst [vmem:[#allocation2 + $0x24] sm:$0xf] %v4138_v31  ;;  %1086 = vmatmul.mubr.bf16.gmra.mrb[108].mxu1 %v4839_v28 }
 0x239   : > { %3842 = vmatprep.mubr.msk.bf16.mxu1 %vm736_vm1, %v4840_v30 }
 0x23b   : > { %v879_v33 = vpop.f32.mrb[4].mxu1 }
 0x23c   : > { %v4139_v34 = vpack.c.bf16 %v879_v33, %v879_v33  ;;  %v881_v35 = vpop.f32.mrb[5].mxu1 }
 0x23d   : > { %v882_v37 = vpop.f32.mrb[6].mxu1  ;;  %v4888_v35 = vld [vmem:[%s5987_s4 + $0xe8] sm:$0xff]  }
 0x23e   : > { %1156 = vst [vmem:[#allocation2 + $0x48] sm:$0xf] %v4139_v34  ;;  %v4140_v39 = vpack.c.bf16 %v882_v37, %v882_v37  ;;  %v884_v40 = vpop.f32.mrb[7].mxu1 }
 0x23f   : > { %v4867_v7 = vld [vmem:[#allocation2] ss:$36 sps:$4 sm:$0xff]  }
 0x240   : > { %1157 = vst [vmem:[#allocation2 + $0x6c] sm:$0xf] %v4140_v39  ;;  %1094 = vmatmul.mubr.bf16.gmra.mrb[112].mxu1 %v4842_v36  ;;  %v4890_v39 = vld [vmem:[%s5987_s4 + $0xf0] sm:$0xff]  }
 0x241   : > { %3843 = vmatprep.mubr.msk.bf16.mxu1 %vm736_vm1, %v4847_v38  ;;  %v4889_v38 = vld [vmem:[%s5987_s4 + $0xa8] sm:$0xff]  }
 0x243   : > { %v887_v41 = vpop.f32.mrb[8].mxu1 }
 0x244   : > { %v4141_v42 = vpack.c.bf16 %v887_v41, %v887_v41  ;;  %v889_v43 = vpop.f32.mrb[9].mxu1 }
 0x245   : > { %v890_v45 = vpop.f32.mrb[10].mxu1 }
 0x246   : > { %1158 = vst [vmem:[#allocation2 + $0x90] sm:$0xf] %v4141_v42  ;;  %v4142_v47 = vpack.c.bf16 %v890_v45, %v890_v45  ;;  %v892_v48 = vpop.f32.mrb[11].mxu1 }
 0x247   : > { %v4872_v24 = vld [vmem:[#allocation2 + $0x48] ss:$36 sps:$4 sm:$0xff]   ;;  %v4892_v48 = vld [vmem:[%s5987_s4 + $0xf8] sm:$0xff]  }
 0x248   : > { %1159 = vst [vmem:[#allocation2 + $0xb4] sm:$0xf] %v4142_v47  ;;  %1102 = vmatmul.mubr.bf16.gmra.mrb[116].mxu1 %v4849_v44  ;;  %v4891_v44 = vld [vmem:[%s5987_s4 + $0xb0] sm:$0xff]  }
 0x249   : > { %3844 = vmatprep.mubr.msk.bf16.mxu1 %vm736_vm1, %v4854_v46 }
 0x24b   : > { %v895_v50 = vpop.f32.mrb[12].mxu1 }
 0x24c   : > { %v4143_v51 = vpack.c.bf16 %v895_v50, %v895_v50  ;;  %v897_v52 = vpop.f32.mrb[13].mxu1  ;;  %v4905_v50 = vld [vmem:[%s5987_s4 + $0x140] sm:$0xff]  }
 0x24d   : > { %v898_v54 = vpop.f32.mrb[14].mxu1 }
 0x24e   : > { %1160 = vst [vmem:[#allocation2 + $0xd8] sm:$0xf] %v4143_v51  ;;  %v4144_v56 = vpack.c.bf16 %v898_v54, %v898_v54  ;;  %v900_v57 = vpop.f32.mrb[15].mxu1 }
 0x24f   : > { %v4875_v32 = vld [vmem:[#allocation2 + $0x90] ss:$36 sps:$4 sm:$0xff]  }
 0x250   : > { %1190 = vst [vmem:[#allocation2 + $0x4] sm:$0xf] %v4144_v56  ;;  %1110 = vmatmul.mubr.bf16.gmra.mrb[120].mxu1 %v4856_v53 }
 0x251   : > { %3845 = vmatprep.mubr.msk.bf16.mxu1 %vm736_vm1, %v3813_v55 }
 0x253   : > { %v903_v58 = vpop.f32.mrb[16].mxu1 }
 0x254   : > { %v4145_v59 = vpack.c.bf16 %v903_v58, %v903_v58  ;;  %v905_v60 = vpop.f32.mrb[17].mxu1 }
 0x255   : > { %v906_v62 = vpop.f32.mrb[18].mxu1 }
 0x256   : > { %1191 = vst [vmem:[#allocation2 + $0x28] sm:$0xf] %v4145_v59  ;;  %v4146_v63 = vpack.c.bf16 %v906_v62, %v906_v62  ;;  %v908_v0 = vpop.f32.mrb[19].mxu1 }
 0x258   : > { %1192 = vst [vmem:[#allocation2 + $0x4c] sm:$0xf] %v4146_v63  ;;  %1118 = vmatmul.mubr.bf16.gmra.mrb[124].mxu1 %v3812_v61 }
 0x25b   : > { %v911_v2 = vpop.f32.mrb[20].mxu1 }
 0x25c   : > { %v4147_v3 = vpack.c.bf16 %v911_v2, %v911_v2  ;;  %v913_v4 = vpop.f32.mrb[21].mxu1 }
 0x25d   : > { %v914_v6 = vpop.f32.mrb[22].mxu1  ;;  %v4869_v8 = vld [vmem:[#allocation2 + $0x4] ss:$36 sps:$4 sm:$0xff]  }
 0x25e   : > { %1193 = vst [vmem:[#allocation2 + $0x70] sm:$0xf] %v4147_v3  ;;  %v4148_v9 = vpack.c.bf16 %v914_v6, %v914_v6  ;;  %v916_v10 = vpop.f32.mrb[23].mxu1  ;;  %2269 = vmatprep.mubr.bf16.mxu0 %v4869_v8 }
 0x25f   : > { %2270 = vmatmul.mubr.bf16.vlgmr.msra.gmra.mrb[52].mxu0 %v4867_v7 }
 0x260   : > { %1194 = vst [vmem:[#allocation2 + $0x94] sm:$0xf] %v4148_v9  ;;  %4327 = vmatpush3.bf16.msra.mxu0 %v4879_v5  ;;  %v4906_v9 = vld [vmem:[%s5987_s4 + $0x100] sm:$0xff]  }
 0x261   : > { %4328 = vmatprep.subr.bf16.mxu0 %v4880_v11 }
 0x263   : > { %v919_v14 = vpop.f32.mrb[24].mxu1 }
 0x264   : > { %v4149_v15 = vpack.c.bf16 %v919_v14, %v919_v14  ;;  %v921_v16 = vpop.f32.mrb[25].mxu1  ;;  %4329 = vmatpush3.bf16.msra.mxu0 %v4881_v12 }
 0x265   : > { %v922_v18 = vpop.f32.mrb[26].mxu1  ;;  %v4870_v22 = vld [vmem:[#allocation2 + $0x4c] ss:$36 sps:$4 sm:$0xff]   ;;  %4330 = vmatprep.subr.bf16.mxu0 %v4882_v13 }
 0x266   : > { %1195 = vst [vmem:[#allocation2 + $0xb8] sm:$0xf] %v4149_v15  ;;  %v4150_v19 = vpack.c.bf16 %v922_v18, %v922_v18  ;;  %v924_v20 = vpop.f32.mrb[27].mxu1  ;;  %2277 = vmatprep.mubr.bf16.mxu0 %v4870_v22  ;;  %v4907_v15 = vld [vmem:[%s5987_s4 + $0x148] sm:$0xff]  }
 0x267   : > { %2278 = vmatmul.mubr.bf16.gmra.mrb[56].mxu0 %v4872_v24  ;;  %v4908_v16 = vld [vmem:[%s5987_s4 + $0x108] sm:$0xff]  }
 0x268   : > { %1196 = vst [vmem:[#allocation2 + $0xdc] sm:$0xf] %v4150_v19  ;;  %4331 = vmatpush3.bf16.msra.mxu0 %v4883_v17  ;;  %v4909_v17 = vld [vmem:[%s5987_s4 + $0x150] sm:$0xff]  }
 0x269   : > { %4332 = vmatprep.subr.bf16.mxu0 %v4884_v21  ;;  %v4910_v19 = vld [vmem:[%s5987_s4 + $0x110] sm:$0xff]  }
 0x26b   : > { %v927_v26 = vpop.f32.mrb[28].mxu1 }
 0x26c   : > { %v4151_v27 = vpack.c.bf16 %v927_v26, %v927_v26  ;;  %v929_v28 = vpop.f32.mrb[29].mxu1  ;;  %4333 = vmatpush3.bf16.msra.mxu0 %v4885_v23 }
 0x26d   : > { %v930_v30 = vpop.f32.mrb[30].mxu1  ;;  %v4873_v31 = vld [vmem:[#allocation2 + $0x94] ss:$36 sps:$4 sm:$0xff]   ;;  %4334 = vmatprep.subr.bf16.mxu0 %v4886_v25 }
 0x26e   : > { %1226 = vst [vmem:[#allocation2 + $0x8] sm:$0xf] %v4151_v27  ;;  %v4152_v33 = vpack.c.bf16 %v930_v30, %v930_v30  ;;  %v932_v34 = vpop.f32.mrb[31].mxu1  ;;  %2285 = vmatprep.mubr.bf16.mxu0 %v4873_v31  ;;  %v4911_v27 = vld [vmem:[%s5987_s4 + $0x158] sm:$0xff]  }
 0x26f   : > { %v1479_v36 = vld [vmem:[#allocation2 + $0xd8] sm:$0xff]  ;;  %2286 = vmatmul.mubr.bf16.gmra.mrb[60].mxu0 %v4875_v32 }
 0x270   : > { %1227 = vst [vmem:[#allocation2 + $0x2c] sm:$0xf] %v4152_v33  ;;  %v3938_v37 = vcombine.high %v1479_v36, %v1479_v36  ;;  %4335 = vmatpush3.bf16.msra.mxu0 %v4887_v29  ;;  %v3937_v47 = vcombine.low %v1479_v36, %v1479_v36  ;;  %v4912_v28 = vld [vmem:[%s5987_s4 + $0x118] sm:$0xff]   ;;  %v4913_v29 = vld [vmem:[%s5987_s4 + $0x160] sm:$0xff]  }
 0x271   : > { %4336 = vmatprep.subr.bf16.mxu0 %v4888_v35  ;;  %v4914_v33 = vld [vmem:[%s5987_s4 + $0x120] sm:$0xff]  }
 0x272   : > { %2293 = vmatprep.mubr.bf16.mxu0 %v3938_v37 }
 0x273   : > { %v935_v40 = vpop.f32.mrb[32].mxu1 }
 0x274   : > { %v4153_v41 = vpack.c.bf16 %v935_v40, %v935_v40  ;;  %v937_v42 = vpop.f32.mrb[33].mxu1  ;;  %4337 = vmatpush3.bf16.msra.mxu0 %v4889_v38 }
 0x275   : > { %v938_v43 = vpop.f32.mrb[34].mxu1  ;;  %4338 = vmatprep.subr.bf16.mxu0 %v4890_v39  ;;  %v4915_v39 = vld [vmem:[%s5987_s4 + $0x168] sm:$0xff]  }
 0x276   : > { %1228 = vst [vmem:[#allocation2 + $0x50] sm:$0xf] %v4153_v41  ;;  %v4154_v45 = vpack.c.bf16 %v938_v43, %v938_v43  ;;  %v940_v46 = vpop.f32.mrb[35].mxu1  ;;  %v4916_v42 = vld [vmem:[%s5987_s4 + $0x128] sm:$0xff]   ;;  %v4917_v43 = vld [vmem:[%s5987_s4 + $0x170] sm:$0xff]  }
 0x277   : > { %2294 = vmatmul.mubr.bf16.gmra.mrb[64].mxu0 %v3937_v47  ;;  %v4894_v11 = vld [vmem:[#allocation2 + $0x8] ss:$36 sps:$4 sm:$0xff]  }
 0x278   : > { %1229 = vst [vmem:[#allocation2 + $0x74] sm:$0xf] %v4154_v45  ;;  %4339 = vmatpush3.bf16.msra.mxu0 %v4891_v44 }
 0x279   : > { %4340 = vmatprep.subr.bf16.mxu0 %v4892_v48  ;;  %v4918_v48 = vld [vmem:[%s5987_s4 + $0x130] sm:$0xff]  }
 0x27b   : > { %v943_v51 = vpop.f32.mrb[36].mxu1 }
 0x27c   : > { %v4155_v52 = vpack.c.bf16 %v943_v51, %v943_v51  ;;  %v945_v53 = vpop.f32.mrb[37].mxu1  ;;  %4341 = vmatpush3.bf16.msra.mxu0 %v4893_v49 }
 0x27d   : > { %v946_v54 = vpop.f32.mrb[38].mxu1  ;;  %4366 = vmatprep.subr.bf16.mxu0 %v4905_v50  ;;  %v4920_v53 = vld [vmem:[%s5987_s4 + $0x138] sm:$0xff]  }
 0x27e   : > { %1230 = vst [vmem:[#allocation2 + $0x98] sm:$0xf] %v4155_v52  ;;  %v4156_v55 = vpack.c.bf16 %v946_v54, %v946_v54  ;;  %v948_v56 = vpop.f32.mrb[39].mxu1  ;;  %v4919_v52 = vld [vmem:[%s5987_s4 + $0x178] sm:$0xff]   ;;  %v4932_v54 = vld [vmem:[%s5987_s4 + $0x1c0] sm:$0xff]  }
 0x27f   : > { %v4899_v23 = vld [vmem:[#allocation2 + $0x50] ss:$36 sps:$4 sm:$0xff]  }
 0x280   : > { %1231 = vst [vmem:[#allocation2 + $0xbc] sm:$0xf] %v4156_v55 }
 0x283   : > { %v951_v57 = vpop.f32.mrb[40].mxu1 }
 0x284   : > { %v4157_v58 = vpack.c.bf16 %v951_v57, %v951_v57  ;;  %v953_v59 = vpop.f32.mrb[41].mxu1 }
 0x285   : > { %v954_v60 = vpop.f32.mrb[42].mxu1 }
 0x286   : > { %1232 = vst [vmem:[#allocation2 + $0xe0] sm:$0xf] %v4157_v58  ;;  %v4158_v61 = vpack.c.bf16 %v954_v60, %v954_v60  ;;  %v956_v62 = vpop.f32.mrb[43].mxu1 }
 0x287   : > { %v4902_v36 = vld [vmem:[#allocation2 + $0x98] ss:$36 sps:$4 sm:$0xff]  }
 0x288   : > { %1262 = vst [vmem:[#allocation2 + $0xc] sm:$0xf] %v4158_v61 }
 0x28b   : > { %v959_v63 = vpop.f32.mrb[44].mxu1 }
 0x28c   : > { %v4159_v0 = vpack.c.bf16 %v959_v63, %v959_v63  ;;  %v961_v2 = vpop.f32.mrb[45].mxu1 }
 0x28d   : > { %v962_v3 = vpop.f32.mrb[46].mxu1 }
 0x28e   : > { %1263 = vst [vmem:[#allocation2 + $0x30] sm:$0xf] %v4159_v0  ;;  %v4160_v4 = vpack.c.bf16 %v962_v3, %v962_v3  ;;  %v964_v5 = vpop.f32.mrb[47].mxu1 }
 0x290   : > { %1264 = vst [vmem:[#allocation2 + $0x54] sm:$0xf] %v4160_v4 }
 0x293   : > { %v967_v6 = vpop.f32.mrb[48].mxu1 }
 0x294   : > { %v4161_v7 = vpack.c.bf16 %v967_v6, %v967_v6  ;;  %v969_v8 = vpop.f32.mrb[49].mxu1 }
 0x295   : > { %v970_v10 = vpop.f32.mrb[50].mxu1  ;;  %v4896_v12 = vld [vmem:[#allocation2 + $0xc] ss:$36 sps:$4 sm:$0xff]  }
 0x296   : > { %1265 = vst [vmem:[#allocation2 + $0x78] sm:$0xf] %v4161_v7  ;;  %v4162_v13 = vpack.c.bf16 %v970_v10, %v970_v10  ;;  %v972_v14 = vpop.f32.mrb[51].mxu1  ;;  %2333 = vmatprep.mubr.bf16.mxu0 %v4896_v12 }
 0x297   : > { %2334 = vmatmul.mubr.bf16.vlgmr.msra.gmra.mrb[68].mxu0 %v4894_v11 }
 0x298   : > { %1266 = vst [vmem:[#allocation2 + $0x9c] sm:$0xf] %v4162_v13  ;;  %4367 = vmatpush3.bf16.msra.mxu0 %v4906_v9  ;;  %v4933_v13 = vld [vmem:[%s5987_s4 + $0x180] sm:$0xff]  }
 0x299   : > { %4368 = vmatprep.subr.bf16.mxu0 %v4907_v15 }
 0x29b   : > { %v975_v18 = vpop.f32.mrb[52].mxu1 }
 0x29c   : > { %v4163_v22 = vpack.c.bf16 %v975_v18, %v975_v18  ;;  %v977_v24 = vpop.f32.mrb[53].mxu1  ;;  %4369 = vmatpush3.bf16.msra.mxu0 %v4908_v16 }
 0x29d   : > { %v978_v20 = vpop.f32.mrb[54].mxu1  ;;  %v4897_v21 = vld [vmem:[#allocation2 + $0x54] ss:$36 sps:$4 sm:$0xff]   ;;  %4370 = vmatprep.subr.bf16.mxu0 %v4909_v17  ;;  %v4935_v24 = vld [vmem:[%s5987_s4 + $0x188] sm:$0xff]  }
 0x29e   : > { %1267 = vst [vmem:[#allocation2 + $0xc0] sm:$0xf] %v4163_v22  ;;  %v4164_v25 = vpack.c.bf16 %v978_v20, %v978_v20  ;;  %v980_v26 = vpop.f32.mrb[55].mxu1  ;;  %2341 = vmatprep.mubr.bf16.mxu0 %v4897_v21  ;;  %v4934_v22 = vld [vmem:[%s5987_s4 + $0x1c8] sm:$0xff]  }
 0x29f   : > { %2342 = vmatmul.mubr.bf16.gmra.mrb[72].mxu0 %v4899_v23 }
 0x2a0   : > { %1268 = vst [vmem:[#allocation2 + $0xe4] sm:$0xf] %v4164_v25  ;;  %4371 = vmatpush3.bf16.msra.mxu0 %v4910_v19  ;;  %v4936_v19 = vld [vmem:[%s5987_s4 + $0x1d0] sm:$0xff]  }
 0x2a1   : > { %4372 = vmatprep.subr.bf16.mxu0 %v4911_v27  ;;  %v4937_v25 = vld [vmem:[%s5987_s4 + $0x190] sm:$0xff]  }
 0x2a3   : > { %v983_v30 = vpop.f32.mrb[56].mxu1 }
 0x2a4   : > { %v4165_v31 = vpack.c.bf16 %v983_v30, %v983_v30  ;;  %v985_v32 = vpop.f32.mrb[57].mxu1  ;;  %4373 = vmatpush3.bf16.msra.mxu0 %v4912_v28 }
 0x2a5   : > { %v986_v34 = vpop.f32.mrb[58].mxu1  ;;  %v4900_v35 = vld [vmem:[#allocation2 + $0x9c] ss:$36 sps:$4 sm:$0xff]   ;;  %4374 = vmatprep.subr.bf16.mxu0 %v4913_v29 }
 0x2a6   : > { %1298 = vst [vmem:[#allocation2 + $0x10] sm:$0xf] %v4165_v31  ;;  %v4166_v37 = vpack.c.bf16 %v986_v34, %v986_v34  ;;  %v988_v38 = vpop.f32.mrb[59].mxu1  ;;  %2349 = vmatprep.mubr.bf16.mxu0 %v4900_v35  ;;  %v4938_v31 = vld [vmem:[%s5987_s4 + $0x1d8] sm:$0xff]  }
 0x2a7   : > { %v1480_v40 = vld [vmem:[#allocation2 + $0xe0] sm:$0xff]  ;;  %2350 = vmatmul.mubr.bf16.gmra.mrb[76].mxu0 %v4902_v36  ;;  %v4939_v32 = vld [vmem:[%s5987_s4 + $0x198] sm:$0xff]  }
 0x2a8   : > { %1299 = vst [vmem:[#allocation2 + $0x34] sm:$0xf] %v4166_v37  ;;  %v3940_v41 = vcombine.high %v1480_v40, %v1480_v40  ;;  %4375 = vmatpush3.bf16.msra.mxu0 %v4914_v33  ;;  %v3939_v51 = vcombine.low %v1480_v40, %v1480_v40  ;;  %v4940_v33 = vld [vmem:[%s5987_s4 + $0x1e0] sm:$0xff]  }
 0x2a9   : > { %4376 = vmatprep.subr.bf16.mxu0 %v4915_v39  ;;  %v4941_v37 = vld [vmem:[%s5987_s4 + $0x1a0] sm:$0xff]  }
 0x2aa   : > { %2357 = vmatprep.mubr.bf16.mxu0 %v3940_v41 }
 0x2ab   : > { %v991_v44 = vpop.f32.mrb[60].mxu1 }
 0x2ac   : > { %v4167_v45 = vpack.c.bf16 %v991_v44, %v991_v44  ;;  %v993_v46 = vpop.f32.mrb[61].mxu1  ;;  %4377 = vmatpush3.bf16.msra.mxu0 %v4916_v42 }
 0x2ad   : > { %v994_v47 = vpop.f32.mrb[62].mxu1  ;;  %4378 = vmatprep.subr.bf16.mxu0 %v4917_v43  ;;  %v4942_v43 = vld [vmem:[%s5987_s4 + $0x1e8] sm:$0xff]  }
 0x2ae   : > { %1300 = vst [vmem:[#allocation2 + $0x58] sm:$0xf] %v4167_v45  ;;  %v4168_v49 = vpack.c.bf16 %v994_v47, %v994_v47  ;;  %v996_v50 = vpop.f32.mrb[63].mxu1  ;;  %v4943_v46 = vld [vmem:[%s5987_s4 + $0x1a8] sm:$0xff]   ;;  %v4944_v47 = vld [vmem:[%s5987_s4 + $0x1f0] sm:$0xff]  }
 0x2af   : > { %2358 = vmatmul.mubr.bf16.gmra.mrb[80].mxu0 %v3939_v51  ;;  %v4921_v15 = vld [vmem:[#allocation2 + $0x10] ss:$36 sps:$4 sm:$0xff]  }
 0x2b0   : > { %1301 = vst [vmem:[#allocation2 + $0x7c] sm:$0xf] %v4168_v49  ;;  %4379 = vmatpush3.bf16.msra.mxu0 %v4918_v48 }
 0x2b1   : > { %4380 = vmatprep.subr.bf16.mxu0 %v4919_v52  ;;  %v4945_v52 = vld [vmem:[%s5987_s4 + $0x1b0] sm:$0xff]  }
 0x2b3   : > { %v999_v55 = vpop.f32.mrb[64].mxu1 }
 0x2b4   : > { %v4169_v56 = vpack.c.bf16 %v999_v55, %v999_v55  ;;  %v1001_v57 = vpop.f32.mrb[65].mxu1  ;;  %4381 = vmatpush3.bf16.msra.mxu0 %v4920_v53 }
 0x2b5   : > { %v1002_v58 = vpop.f32.mrb[66].mxu1  ;;  %4406 = vmatprep.subr.bf16.mxu0 %v4932_v54  ;;  %v4947_v57 = vld [vmem:[%s5987_s4 + $0x1b8] sm:$0xff]  }
 0x2b6   : > { %1302 = vst [vmem:[#allocation2 + $0xa0] sm:$0xf] %v4169_v56  ;;  %v4170_v59 = vpack.c.bf16 %v1002_v58, %v1002_v58  ;;  %v1004_v60 = vpop.f32.mrb[67].mxu1  ;;  %v4946_v56 = vld [vmem:[%s5987_s4 + $0x1f8] sm:$0xff]   ;;  %v4951_v58 = vld [vmem:[%s5987_s4 + $0x200] sm:$0xff]  }
 0x2b7   : > { %v4926_v28 = vld [vmem:[#allocation2 + $0x58] ss:$36 sps:$4 sm:$0xff]  }
 0x2b8   : > { %1303 = vst [vmem:[#allocation2 + $0xc4] sm:$0xf] %v4170_v59 }
 0x2bb   : > { %v1007_v61 = vpop.f32.mrb[68].mxu1 }
 0x2bc   : > { %v4171_v62 = vpack.c.bf16 %v1007_v61, %v1007_v61  ;;  %v1009_v63 = vpop.f32.mrb[69].mxu1 }
 0x2bd   : > { %v1010_v0 = vpop.f32.mrb[70].mxu1 }
 0x2be   : > { %1304 = vst [vmem:[#allocation2 + $0xe8] sm:$0xf] %v4171_v62  ;;  %v4172_v2 = vpack.c.bf16 %v1010_v0, %v1010_v0  ;;  %v1012_v3 = vpop.f32.mrb[71].mxu1 }
 0x2bf   : > { %v4929_v40 = vld [vmem:[#allocation2 + $0xa0] ss:$36 sps:$4 sm:$0xff]  }
 0x2c0   : > { %1334 = vst [vmem:[#allocation2 + $0x14] sm:$0xf] %v4172_v2 }
 0x2c3   : > { %v1015_v4 = vpop.f32.mrb[72].mxu1 }
 0x2c4   : > { %v4173_v5 = vpack.c.bf16 %v1015_v4, %v1015_v4  ;;  %v1017_v6 = vpop.f32.mrb[73].mxu1 }
 0x2c5   : > { %v1018_v7 = vpop.f32.mrb[74].mxu1 }
 0x2c6   : > { %1335 = vst [vmem:[#allocation2 + $0x38] sm:$0xf] %v4173_v5  ;;  %v4174_v8 = vpack.c.bf16 %v1018_v7, %v1018_v7  ;;  %v1020_v9 = vpop.f32.mrb[75].mxu1 }
 0x2c8   : > { %1336 = vst [vmem:[#allocation2 + $0x5c] sm:$0xf] %v4174_v8 }
 0x2cb   : > { %v1023_v10 = vpop.f32.mrb[76].mxu1 }
 0x2cc   : > { %v4175_v11 = vpack.c.bf16 %v1023_v10, %v1023_v10  ;;  %v1025_v12 = vpop.f32.mrb[77].mxu1 }
 0x2cd   : > { %v1026_v14 = vpop.f32.mrb[78].mxu1  ;;  %v4923_v16 = vld [vmem:[#allocation2 + $0x14] ss:$36 sps:$4 sm:$0xff]  }
 0x2ce   : > { %1337 = vst [vmem:[#allocation2 + $0x80] sm:$0xf] %v4175_v11  ;;  %v4176_v17 = vpack.c.bf16 %v1026_v14, %v1026_v14  ;;  %v1028_v18 = vpop.f32.mrb[79].mxu1  ;;  %2397 = vmatprep.mubr.bf16.mxu0 %v4923_v16 }
 0x2cf   : > { %2398 = vmatmul.mubr.bf16.vlgmr.msra.gmra.mrb[84].mxu0 %v4921_v15 }
 0x2d0   : > { %1338 = vst [vmem:[#allocation2 + $0xa4] sm:$0xf] %v4176_v17  ;;  %4407 = vmatpush3.bf16.msra.mxu0 %v4933_v13 }
 0x2d1   : > { %4408 = vmatprep.subr.bf16.mxu0 %v4934_v22 }
 0x2d3   : > { %v1031_v20 = vpop.f32.mrb[80].mxu1 }
 0x2d4   : > { %v4177_v21 = vpack.c.bf16 %v1031_v20, %v1031_v20  ;;  %v1033_v23 = vpop.f32.mrb[81].mxu1  ;;  %4409 = vmatpush3.bf16.msra.mxu0 %v4935_v24  ;;  %v4952_v20 = vld [vmem:[%s5987_s4 + $0x208] sm:$0xff]  }
 0x2d5   : > { %v1034_v26 = vpop.f32.mrb[82].mxu1  ;;  %v4924_v27 = vld [vmem:[#allocation2 + $0x5c] ss:$36 sps:$4 sm:$0xff]   ;;  %4410 = vmatprep.subr.bf16.mxu0 %v4936_v19 }
 0x2d6   : > { %1339 = vst [vmem:[#allocation2 + $0xc8] sm:$0xf] %v4177_v21  ;;  %v4178_v29 = vpack.c.bf16 %v1034_v26, %v1034_v26  ;;  %v1036_v30 = vpop.f32.mrb[83].mxu1  ;;  %2405 = vmatprep.mubr.bf16.mxu0 %v4924_v27  ;;  %v4956_v21 = vld [vmem:[%s5987_s4 + $0x210] sm:$0xff]  }
 0x2d7   : > { %2406 = vmatmul.mubr.bf16.gmra.mrb[88].mxu0 %v4926_v28 }
 0x2d8   : > { %1340 = vst [vmem:[#allocation2 + $0xec] sm:$0xf] %v4178_v29  ;;  %4411 = vmatpush3.bf16.msra.mxu0 %v4937_v25 }
 0x2d9   : > { %4412 = vmatprep.subr.bf16.mxu0 %v4938_v31 }
 0x2db   : > { %v1039_v34 = vpop.f32.mrb[84].mxu1 }
 0x2dc   : > { %v4179_v35 = vpack.c.bf16 %v1039_v34, %v1039_v34  ;;  %v1041_v36 = vpop.f32.mrb[85].mxu1  ;;  %4413 = vmatpush3.bf16.msra.mxu0 %v4939_v32  ;;  %v4957_v32 = vld [vmem:[%s5987_s4 + $0x218] sm:$0xff]  }
 0x2dd   : > { %v1042_v38 = vpop.f32.mrb[86].mxu1  ;;  %v4927_v39 = vld [vmem:[#allocation2 + $0xa4] ss:$36 sps:$4 sm:$0xff]   ;;  %4414 = vmatprep.subr.bf16.mxu0 %v4940_v33 }
 0x2de   : > { %1370 = vst [vmem:[#allocation2 + $0x18] sm:$0xf] %v4179_v35  ;;  %v4180_v41 = vpack.c.bf16 %v1042_v38, %v1042_v38  ;;  %v1044_v42 = vpop.f32.mrb[87].mxu1  ;;  %2413 = vmatprep.mubr.bf16.mxu0 %v4927_v39  ;;  %v4962_v33 = vld [vmem:[%s5987_s4 + $0x220] sm:$0xff]  }
 0x2df   : > { %v1481_v44 = vld [vmem:[#allocation2 + $0xe8] sm:$0xff]  ;;  %2414 = vmatmul.mubr.bf16.gmra.mrb[92].mxu0 %v4929_v40 }
 0x2e0   : > { %1371 = vst [vmem:[#allocation2 + $0x3c] sm:$0xf] %v4180_v41  ;;  %v3942_v45 = vcombine.high %v1481_v44, %v1481_v44  ;;  %4415 = vmatpush3.bf16.msra.mxu0 %v4941_v37  ;;  %v3941_v55 = vcombine.low %v1481_v44, %v1481_v44  ;;  %v4963_v42 = vld [vmem:[%s5987_s4 + $0x228] sm:$0xff]  }
 0x2e1   : > { %4416 = vmatprep.subr.bf16.mxu0 %v4942_v43 }
 0x2e2   : > { %2421 = vmatprep.mubr.bf16.mxu0 %v3942_v45  ;;  %v4965_v45 = vld [vmem:[%s5987_s4 + $0x230] sm:$0xff]  }
 0x2e3   : > { %v1047_v48 = vpop.f32.mrb[88].mxu1 }
 0x2e4   : > { %v4181_v49 = vpack.c.bf16 %v1047_v48, %v1047_v48  ;;  %v1049_v50 = vpop.f32.mrb[89].mxu1  ;;  %4417 = vmatpush3.bf16.msra.mxu0 %v4943_v46 }
 0x2e5   : > { %v1050_v51 = vpop.f32.mrb[90].mxu1  ;;  %4418 = vmatprep.subr.bf16.mxu0 %v4944_v47 }
 0x2e6   : > { %1372 = vst [vmem:[#allocation2 + $0x60] sm:$0xf] %v4181_v49  ;;  %v4182_v53 = vpack.c.bf16 %v1050_v51, %v1050_v51  ;;  %v1052_v54 = vpop.f32.mrb[91].mxu1 }
 0x2e7   : > { %2422 = vmatmul.mubr.bf16.gmra.mrb[96].mxu0 %v3941_v55  ;;  %v4948_v18 = vld [vmem:[#allocation2 + $0x18] ss:$36 sps:$4 sm:$0xff]  }
 0x2e8   : > { %1373 = vst [vmem:[#allocation2 + $0x84] sm:$0xf] %v4182_v53  ;;  %4419 = vmatpush3.bf16.msra.mxu0 %v4945_v52  ;;  %v4967_v53 = vld [vmem:[%s5987_s4 + $0x238] sm:$0xff]  }
 0x2e9   : > { %4420 = vmatprep.subr.bf16.mxu0 %v4946_v56 }
 0x2eb   : > { %v1055_v59 = vpop.f32.mrb[92].mxu1 }
 0x2ec   : > { %v4183_v60 = vpack.c.bf16 %v1055_v59, %v1055_v59  ;;  %v1057_v61 = vpop.f32.mrb[93].mxu1  ;;  %4421 = vmatpush3.bf16.msra.mxu0 %v4947_v57 }
 0x2ed   : > { %v1058_v62 = vpop.f32.mrb[94].mxu1  ;;  %4636 = vmatprep.subr.bf16.mxu0 %v4951_v58 }
 0x2ee   : > { %1374 = vst [vmem:[#allocation2 + $0xa8] sm:$0xf] %v4183_v60  ;;  %v4184_v63 = vpack.c.bf16 %v1058_v62, %v1058_v62  ;;  %v1060_v0 = vpop.f32.mrb[95].mxu1 }
 0x2ef   : > { %v4955_v29 = vld [vmem:[#allocation2 + $0x60] ss:$36 sps:$4 sm:$0xff]  }
 0x2f0   : > { %1375 = vst [vmem:[#allocation2 + $0xcc] sm:$0xf] %v4184_v63 }
 0x2f3   : > { %v1063_v2 = vpop.f32.mrb[96].mxu1 }
 0x2f4   : > { %v4185_v3 = vpack.c.bf16 %v1063_v2, %v1063_v2  ;;  %v1065_v4 = vpop.f32.mrb[97].mxu1 }
 0x2f5   : > { %v1066_v5 = vpop.f32.mrb[98].mxu1 }
 0x2f6   : > { %1376 = vst [vmem:[#allocation2 + $0xf0] sm:$0xf] %v4185_v3  ;;  %v4186_v6 = vpack.c.bf16 %v1066_v5, %v1066_v5  ;;  %v1068_v7 = vpop.f32.mrb[99].mxu1 }
 0x2f7   : > { %v4960_v39 = vld [vmem:[#allocation2 + $0xa8] ss:$36 sps:$4 sm:$0xff]  }
 0x2f8   : > { %1406 = vst [vmem:[#allocation2 + $0x1c] sm:$0xf] %v4186_v6 }
 0x2fb   : > { %v1071_v8 = vpop.f32.mrb[100].mxu1 }
 0x2fc   : > { %v4187_v9 = vpack.c.bf16 %v1071_v8, %v1071_v8  ;;  %v1073_v10 = vpop.f32.mrb[101].mxu1 }
 0x2fd   : > { %v1074_v11 = vpop.f32.mrb[102].mxu1 }
 0x2fe   : > { %1407 = vst [vmem:[#allocation2 + $0x40] sm:$0xf] %v4187_v9  ;;  %v4188_v12 = vpack.c.bf16 %v1074_v11, %v1074_v11  ;;  %v1076_v13 = vpop.f32.mrb[103].mxu1 }
 0x300   : > { %1408 = vst [vmem:[#allocation2 + $0x64] sm:$0xf] %v4188_v12 }
 0x303   : > { %v1079_v14 = vpop.f32.mrb[104].mxu1 }
 0x304   : > { %v4189_v15 = vpack.c.bf16 %v1079_v14, %v1079_v14  ;;  %v1081_v16 = vpop.f32.mrb[105].mxu1 }
 0x305   : > { %v1082_v17 = vpop.f32.mrb[106].mxu1  ;;  %v4950_v22 = vld [vmem:[#allocation2 + $0x1c] ss:$36 sps:$4 sm:$0xff]  }
 0x306   : > { %1409 = vst [vmem:[#allocation2 + $0x88] sm:$0xf] %v4189_v15  ;;  %v4190_v24 = vpack.c.bf16 %v1082_v17, %v1082_v17  ;;  %v1084_v19 = vpop.f32.mrb[107].mxu1  ;;  %2461 = vmatprep.mubr.bf16.mxu0 %v4950_v22 }
 0x307   : > { %2462 = vmatmul.mubr.bf16.vlgmr.msra.gmra.mrb[100].mxu0 %v4948_v18 }
 0x308   : > { %1410 = vst [vmem:[#allocation2 + $0xac] sm:$0xf] %v4190_v24  ;;  %4637 = vmatpush3.bf16.msra.mxu0 %v4951_v58 }
 0x309   : > { %4638 = vmatprep.subr.bf16.mxu0 %v4952_v20 }
 0x30b   : > { %v1087_v23 = vpop.f32.mrb[108].mxu1 }
 0x30c   : > { %v4191_v25 = vpack.c.bf16 %v1087_v23, %v1087_v23  ;;  %v1089_v26 = vpop.f32.mrb[109].mxu1  ;;  %4639 = vmatpush3.bf16.msra.mxu0 %v4952_v20 }
 0x30d   : > { %v1090_v27 = vpop.f32.mrb[110].mxu1  ;;  %v4953_v28 = vld [vmem:[#allocation2 + $0x64] ss:$36 sps:$4 sm:$0xff]   ;;  %4640 = vmatprep.subr.bf16.mxu0 %v4956_v21 }
 0x30e   : > { %1411 = vst [vmem:[#allocation2 + $0xd0] sm:$0xf] %v4191_v25  ;;  %v4192_v30 = vpack.c.bf16 %v1090_v27, %v1090_v27  ;;  %v1092_v31 = vpop.f32.mrb[111].mxu1  ;;  %2469 = vmatprep.mubr.bf16.mxu0 %v4953_v28 }
 0x30f   : > { %2470 = vmatmul.mubr.bf16.gmra.mrb[104].mxu0 %v4955_v29  ;;  %v3909_v29 = vld [vmem:[%s5988_s5] ss:$0 sm:$0xff] }
 0x310   : > { %1412 = vst [vmem:[#allocation2 + $0xf4] sm:$0xf] %v4192_v30  ;;  %4641 = vmatpush3.bf16.msra.mxu0 %v4956_v21 }
 0x311   : > { %4642 = vmatprep.subr.bf16.mxu0 %v4957_v32 }
 0x313   : > { %v1095_v34 = vpop.f32.mrb[112].mxu1 }
 0x314   : > { %v4193_v35 = vpack.c.bf16 %v1095_v34, %v1095_v34  ;;  %v1097_v36 = vpop.f32.mrb[113].mxu1  ;;  %4643 = vmatpush3.bf16.msra.mxu0 %v4957_v32 }
 0x315   : > { %v1098_v37 = vpop.f32.mrb[114].mxu1  ;;  %v4958_v38 = vld [vmem:[#allocation2 + $0xac] ss:$36 sps:$4 sm:$0xff]   ;;  %4644 = vmatprep.subr.bf16.mxu0 %v4962_v33 }
 0x316   : > { %1442 = vst [vmem:[#allocation2 + $0x20] sm:$0xf] %v4193_v35  ;;  %v4194_v40 = vpack.c.bf16 %v1098_v37, %v1098_v37  ;;  %v1100_v41 = vpop.f32.mrb[115].mxu1  ;;  %2477 = vmatprep.mubr.bf16.mxu0 %v4958_v38 }
 0x317   : > { %v1482_v43 = vld [vmem:[#allocation2 + $0xf0] sm:$0xff]  ;;  %2478 = vmatmul.mubr.bf16.gmra.mrb[108].mxu0 %v4960_v39 }
 0x318   : > { %1443 = vst [vmem:[#allocation2 + $0x44] sm:$0xf] %v4194_v40  ;;  %v3944_v44 = vcombine.high %v1482_v43, %v1482_v43  ;;  %4645 = vmatpush3.bf16.msra.mxu0 %v4962_v33  ;;  %v3943_v52 = vcombine.low %v1482_v43, %v1482_v43 }
 0x319   : > { %4646 = vmatprep.subr.bf16.mxu0 %v4963_v42 }
 0x31a   : > { %2485 = vmatprep.mubr.bf16.mxu0 %v3944_v44 }
 0x31b   : > { %v1103_v46 = vpop.f32.mrb[116].mxu1 }
 0x31c   : > { %v4195_v47 = vpack.c.bf16 %v1103_v46, %v1103_v46  ;;  %v1105_v48 = vpop.f32.mrb[117].mxu1  ;;  %4647 = vmatpush3.bf16.msra.mxu0 %v4963_v42 }
 0x31d   : > { %v1106_v49 = vpop.f32.mrb[118].mxu1  ;;  %4648 = vmatprep.subr.bf16.mxu0 %v4965_v45 }
 0x31e   : > { %1444 = vst [vmem:[#allocation2 + $0x68] sm:$0xf] %v4195_v47  ;;  %v4196_v50 = vpack.c.bf16 %v1106_v49, %v1106_v49  ;;  %v1108_v51 = vpop.f32.mrb[119].mxu1 }
 0x31f   : > { %v4966_v54 = vld [vmem:[#allocation2 + $0x20] ss:$36 sps:$4 sm:$0xff]   ;;  %2486 = vmatmul.mubr.bf16.gmra.mrb[112].mxu0 %v3943_v52 }
 0x320   : > { %1445 = vst [vmem:[#allocation2 + $0x8c] sm:$0xf] %v4196_v50  ;;  %4652 = vmatprep.mubr.bf16.mxu0 %v4966_v54  ;;  %4649 = vmatpush3.bf16.msra.mxu0 %v4965_v45 }
 0x321   : > { %4650 = vmatprep.subr.bf16.mxu0 %v4967_v53 }
 0x323   : > { %v1111_v55 = vpop.f32.mrb[120].mxu1 }
 0x324   : > { %v4197_v56 = vpack.c.bf16 %v1111_v55, %v1111_v55  ;;  %v1113_v57 = vpop.f32.mrb[121].mxu1  ;;  %4651 = vmatpush3.bf16.msra.mxu0 %v4967_v53 }
 0x325   : > { %v1114_v58 = vpop.f32.mrb[122].mxu1  ;;  %4660 = vmatprep.subr.bf16.mxu0 %v5061_v1 }
 0x326   : > { %1446 = vst [vmem:[#allocation2 + $0xb0] sm:$0xf] %v4197_v56  ;;  %v4198_v59 = vpack.c.bf16 %v1114_v58, %v1114_v58  ;;  %v1116_v60 = vpop.f32.mrb[123].mxu1 }
 0x327   : > { %v4968_v61 = vld [vmem:[#allocation2 + $0x68] ss:$36 sps:$4 sm:$0xff]  }
 0x328   : > { %1447 = vst [vmem:[#allocation2 + $0xd4] sm:$0xf] %v4198_v59  ;;  %4653 = vmatmul.mubr.bf16.vlgmr.msra.gmra.mrb[116].mxu0 %v4968_v61 }
 0x32b   : > { %v1119_v62 = vpop.f32.mrb[124].mxu1 }
 0x32c   : > { %v4199_v63 = vpack.c.bf16 %v1119_v62, %v1119_v62  ;;  %v1121_v0 = vpop.f32.mrb[125].mxu1 }
 0x32d   : > { %v1122_v2 = vpop.f32.mrb[126].mxu1 }
 0x32e   : > { %1448 = vst [vmem:[#allocation2 + $0xf8] sm:$0xf] %v4199_v63  ;;  %v1123_v3 = vpop.f32.mrb[127].mxu1 }
 0x32f   : > { %v4969_v4 = vld [vmem:[#allocation2 + $0xb0] ss:$36 sps:$4 sm:$0xff]  }
 0x330   : > { %4656 = vmatprep.mubr.bf16.mxu0 %v4969_v4  ;;  %v4971_v4 = vld [vmem:[%s5990_s7 + $0x40] sm:$0xff]  }
 0x331   : > { %4471 = vmatprep.subr.bf16.mxu1 %v4971_v4 }
 0x332   : > { %v4302_v5 = vpop.f32.mrb[52].mxu0 }
 0x333   : > { %v4303_v6 = vpop.f32.mrb[53].mxu0 }
 0x334   : > { %v4304_v7 = vadd.f32 %v4303_v6, %v4302_v5  ;;  %v4305_v8 = vpop.f32.mrb[54].mxu0  ;;  %v4972_v5 = vld [vmem:[%s5990_s7] sm:$0xff]  }
 0x335   : > { %v4970_v9 = vld [vmem:[#allocation2 + $0xf8] ss:$0 sps:$4 sm:$0xff]   ;;  %v4306_v10 = vpop.f32.mrb[55].mxu0  ;;  %4472 = vmatpush3.bf16.msra.mxu1 %v4972_v5 }
 0x336   : > { %v4307_v11 = vadd.f32 %v4306_v10, %v4305_v8  ;;  %4657 = vmatmul.mubr.bf16.gmra.mrb[120].mxu0 %v4970_v9  ;;  %v2272_v32 = vadd.f32 %v4304_v7, %v3909_v29 }
 0x337   : > { %4668 = vmatprep.mubr.msk.bf16.mxu0 %vm5062_vm0, %v5061_v1 }
 0x338   : > { %v2275_v36 = vadd.f32 %v4307_v11, %v3909_v29 }
 0x33a   : > { %v4308_v12 = vpop.f32.mrb[56].mxu0 }
 0x33b   : > { %v4309_v13 = vpop.f32.mrb[57].mxu0 }
 0x33c   : > { %v4310_v14 = vadd.f32 %v4309_v13, %v4308_v12  ;;  %v4311_v15 = vpop.f32.mrb[58].mxu0 }
 0x33d   : > { %v4312_v16 = vpop.f32.mrb[59].mxu0 }
 0x33e   : > { %v4313_v17 = vadd.f32 %v4312_v16, %v4311_v15  ;;  %v2280_v42 = vadd.f32 %v4310_v14, %v3909_v29  ;;  %v4976_v15 = vld [vmem:[%s5990_s7 + $0x48] sm:$0xff]  }
 0x33f   : > { %v4977_v16 = vld [vmem:[%s5990_s7 + $0x8] sm:$0xff]   ;;  %4473 = vmatprep.subr.bf16.mxu1 %v4976_v15 }
 0x340   : > { %v2283_v46 = vadd.f32 %v4313_v17, %v3909_v29  ;;  %4474 = vmatpush3.bf16.msra.mxu1 %v4977_v16 }
 0x342   : > { %v4314_v18 = vpop.f32.mrb[60].mxu0 }
 0x343   : > { %v4315_v22 = vpop.f32.mrb[61].mxu0 }
 0x344   : > { %v4316_v24 = vadd.f32 %v4315_v22, %v4314_v18  ;;  %v4317_v19 = vpop.f32.mrb[62].mxu0 }
 0x345   : > { %v4318_v20 = vpop.f32.mrb[63].mxu0 }
 0x346   : > { %v4319_v21 = vadd.f32 %v4318_v20, %v4317_v19  ;;  %v2288_v52 = vadd.f32 %v4316_v24, %v3909_v29 }
 0x348   : > { %v2291_v56 = vadd.f32 %v4319_v21, %v3909_v29 }
 0x34a   : > { %v4320_v23 = vpop.f32.mrb[64].mxu0 }
 0x34b   : > { %v4321_v25 = vpop.f32.mrb[65].mxu0 }
 0x34c   : > { %v4322_v26 = vadd.f32 %v4321_v25, %v4320_v23  ;;  %v4323_v27 = vpop.f32.mrb[66].mxu0 }
 0x34d   : > { %v4324_v28 = vpop.f32.mrb[67].mxu0 }
 0x34e   : > { %v2296_v62 = vadd.f32 %v4322_v26, %v3909_v29 }
 0x36a   : > { %v4342_v30 = vpop.f32.mrb[68].mxu0 }
 0x36b   : > { %v4343_v31 = vpop.f32.mrb[69].mxu0 }
 0x36c   : > { %v4344_v33 = vadd.f32 %v4343_v31, %v4342_v30  ;;  %v4345_v34 = vpop.f32.mrb[70].mxu0 }
 0x36d   : > { %v4346_v35 = vpop.f32.mrb[71].mxu0 }
 0x36e   : > { %v2336_v37 = vadd.f32 %v4344_v33, %v2272_v32  ;;  %v4347_v38 = vadd.f32 %v4346_v35, %v4345_v34 }
 0x370   : > { %v2339_v39 = vadd.f32 %v4347_v38, %v2275_v36  ;;  %v4982_v38 = vld [vmem:[%s5990_s7 + $0x50] sm:$0xff]  }
 0x371   : > { %4475 = vmatprep.subr.bf16.mxu1 %v4982_v38 }
 0x372   : > { %v4348_v40 = vpop.f32.mrb[72].mxu0 }
 0x373   : > { %v4349_v41 = vpop.f32.mrb[73].mxu0 }
 0x374   : > { %v4350_v43 = vadd.f32 %v4349_v41, %v4348_v40  ;;  %v4351_v44 = vpop.f32.mrb[74].mxu0  ;;  %v4986_v41 = vld [vmem:[%s5990_s7 + $0x58] sm:$0xff]  }
 0x375   : > { %v4352_v45 = vpop.f32.mrb[75].mxu0 }
 0x376   : > { %v2344_v47 = vadd.f32 %v4350_v43, %v2280_v42  ;;  %v4353_v48 = vadd.f32 %v4352_v45, %v4351_v44  ;;  %v4987_v42 = vld [vmem:[%s5990_s7 + $0x18] sm:$0xff]   ;;  %v4988_v43 = vld [vmem:[%s5990_s7 + $0x60] sm:$0xff]  }
 0x378   : > { %v2347_v49 = vadd.f32 %v4353_v48, %v2283_v46  ;;  %v4989_v48 = vld [vmem:[%s5990_s7 + $0x20] sm:$0xff]  }
 0x37a   : > { %v4354_v50 = vpop.f32.mrb[76].mxu0 }
 0x37b   : > { %v4355_v51 = vpop.f32.mrb[77].mxu0 }
 0x37c   : > { %v4356_v53 = vadd.f32 %v4355_v51, %v4354_v50  ;;  %v4357_v54 = vpop.f32.mrb[78].mxu0  ;;  %v4990_v51 = vld [vmem:[%s5990_s7 + $0x68] sm:$0xff]  }
 0x37d   : > { %v4358_v55 = vpop.f32.mrb[79].mxu0 }
 0x37e   : > { %v2352_v57 = vadd.f32 %v4356_v53, %v2288_v52  ;;  %v4359_v58 = vadd.f32 %v4358_v55, %v4357_v54  ;;  %v4991_v53 = vld [vmem:[%s5990_s7 + $0x28] sm:$0xff]   ;;  %v4992_v55 = vld [vmem:[%s5990_s7 + $0x70] sm:$0xff]  }
 0x380   : > { %v2355_v59 = vadd.f32 %v4359_v58, %v2291_v56 }
 0x382   : > { %v4360_v60 = vpop.f32.mrb[80].mxu0 }
 0x383   : > { %v4361_v61 = vpop.f32.mrb[81].mxu0 }
 0x384   : > { %v4362_v63 = vadd.f32 %v4361_v61, %v4360_v60  ;;  %v4363_v0 = vpop.f32.mrb[82].mxu0  ;;  %v4993_v60 = vld [vmem:[%s5990_s7 + $0x30] sm:$0xff]  }
 0x385   : > { %v4364_v2 = vpop.f32.mrb[83].mxu0 }
 0x386   : > { %v2360_v3 = vadd.f32 %v4362_v63, %v2296_v62 }
 0x3a2   : > { %v4382_v6 = vpop.f32.mrb[84].mxu0 }
 0x3a3   : > { %v4383_v7 = vpop.f32.mrb[85].mxu0 }
 0x3a4   : > { %v4384_v8 = vadd.f32 %v4383_v7, %v4382_v6  ;;  %v4385_v9 = vpop.f32.mrb[86].mxu0 }
 0x3a5   : > { %v4386_v10 = vpop.f32.mrb[87].mxu0 }
 0x3a6   : > { %v2400_v11 = vadd.f32 %v4384_v8, %v2336_v37  ;;  %v4387_v12 = vadd.f32 %v4386_v10, %v4385_v9 }
 0x3a8   : > { %v2403_v13 = vadd.f32 %v4387_v12, %v2339_v39  ;;  %v4983_v39 = vld [vmem:[%s5990_s7 + $0x10] sm:$0xff]  }
 0x3a9   : > { %4476 = vmatpush3.bf16.msra.mxu1 %v4983_v39 }
 0x3aa   : > { %v4388_v14 = vpop.f32.mrb[88].mxu0  ;;  %4477 = vmatprep.subr.bf16.mxu1 %v4986_v41  ;;  %v4994_v41 = vld [vmem:[%s5990_s7 + $0x140] sm:$0xff]  }
 0x3ab   : > { %v4389_v17 = vpop.f32.mrb[89].mxu0 }
 0x3ac   : > { %v4390_v18 = vadd.f32 %v4389_v17, %v4388_v14  ;;  %v4391_v22 = vpop.f32.mrb[90].mxu0 }
 0x3ad   : > { %v4392_v24 = vpop.f32.mrb[91].mxu0  ;;  %4478 = vmatpush3.bf16.msra.mxu1 %v4987_v42 }
 0x3ae   : > { %v2408_v19 = vadd.f32 %v4390_v18, %v2344_v47  ;;  %v4393_v20 = vadd.f32 %v4392_v24, %v4391_v22  ;;  %4479 = vmatprep.subr.bf16.mxu1 %v4988_v43  ;;  %v4973_v43 = vld [vmem:[%s5989_s6] sm:$0xff]  }
 0x3b0   : > { %v2411_v21 = vadd.f32 %v4393_v20, %v2347_v49 }
 0x3b1   : > { %4480 = vmatpush3.bf16.msra.mxu1 %v4989_v48  ;;  %v4979_v48 = vld [vmem:[%s5989_s6 + $0x20] sm:$0xff]  }
 0x3b2   : > { %v4394_v23 = vpop.f32.mrb[92].mxu0  ;;  %4481 = vmatprep.subr.bf16.mxu1 %v4990_v51  ;;  %v4984_v51 = vld [vmem:[%s5989_s6 + $0x38] sm:$0xff]  }
 0x3b3   : > { %v4395_v25 = vpop.f32.mrb[93].mxu0 }
 0x3b4   : > { %v4396_v26 = vadd.f32 %v4395_v25, %v4394_v23  ;;  %v4397_v27 = vpop.f32.mrb[94].mxu0 }
 0x3b5   : > { %v4398_v28 = vpop.f32.mrb[95].mxu0  ;;  %4482 = vmatpush3.bf16.msra.mxu1 %v4991_v53  ;;  %v4996_v53 = vld [vmem:[%s5990_s7 + $0x78] sm:$0xff]  }
 0x3b6   : > { %v2416_v29 = vadd.f32 %v4396_v26, %v2352_v57  ;;  %v4399_v30 = vadd.f32 %v4398_v28, %v4397_v27  ;;  %4483 = vmatprep.subr.bf16.mxu1 %v4992_v55  ;;  %v4998_v55 = vld [vmem:[%s5990_s7 + $0x148] sm:$0xff]  }
 0x3b8   : > { %v2419_v31 = vadd.f32 %v4399_v30, %v2355_v59 }
 0x3b9   : > { %4484 = vmatpush3.bf16.msra.mxu1 %v4993_v60  ;;  %v5003_v60 = vld [vmem:[%s5990_s7 + $0x118] sm:$0xff]  }
 0x3ba   : > { %v4400_v32 = vpop.f32.mrb[96].mxu0  ;;  %4485 = vmatprep.subr.bf16.mxu1 %v4996_v53 }
 0x3bb   : > { %v4401_v33 = vpop.f32.mrb[97].mxu0 }
 0x3bc   : > { %v4402_v34 = vadd.f32 %v4401_v33, %v4400_v32  ;;  %v4403_v35 = vpop.f32.mrb[98].mxu0 }
 0x3bd   : > { %v4404_v36 = vpop.f32.mrb[99].mxu0 }
 0x3be   : > { %v2424_v37 = vadd.f32 %v4402_v34, %v2360_v3 }
 0x3da   : > { %v4422_v40 = vpop.f32.mrb[100].mxu0 }
 0x3db   : > { %v4423_v44 = vpop.f32.mrb[101].mxu0 }
 0x3dc   : > { %v4424_v45 = vadd.f32 %v4423_v44, %v4422_v40  ;;  %v4425_v46 = vpop.f32.mrb[102].mxu0  ;;  %v4995_v44 = vld [vmem:[%s5990_s7 + $0x100] sm:$0xff]  }
 0x3dd   : > { %v4426_v47 = vpop.f32.mrb[103].mxu0 }
 0x3de   : > { %v4427_v49 = vadd.f32 %v4426_v47, %v4425_v46  ;;  %v2464_v50 = vadd.f32 %v4424_v45, %v2400_v11  ;;  %v4974_v45 = vld [vmem:[%s5989_s6 + $0x8] sm:$0xff]   ;;  %v4975_v46 = vld [vmem:[%s5989_s6 + $0x10] sm:$0xff]   ;;  %v4978_v47 = vld [vmem:[%s5989_s6 + $0x18] sm:$0xff]  }
 0x3e0   : > { %v2467_v52 = vadd.f32 %v4427_v49, %v2403_v13  ;;  %v4980_v49 = vld [vmem:[%s5989_s6 + $0x28] sm:$0xff]  }
 0x3e2   : > { %v4428_v54 = vpop.f32.mrb[104].mxu0 }
 0x3e3   : > { %v4429_v56 = vpop.f32.mrb[105].mxu0 }
 0x3e4   : > { %v4430_v57 = vadd.f32 %v4429_v56, %v4428_v54  ;;  %v4431_v58 = vpop.f32.mrb[106].mxu0  ;;  %v4997_v54 = vld [vmem:[%s5990_s7 + $0x38] sm:$0xff]   ;;  %v4999_v56 = vld [vmem:[%s5990_s7 + $0x108] sm:$0xff]  }
 0x3e5   : > { %v4432_v59 = vpop.f32.mrb[107].mxu0  ;;  %4486 = vmatpush3.bf16.msra.mxu1 %v4997_v54  ;;  %v5020_v54 = vld [vmem:[%s5990_s7 + $0xa8] sm:$0xff]  }
 0x3e6   : > { %v4433_v61 = vadd.f32 %v4432_v59, %v4431_v58  ;;  %v2472_v62 = vadd.f32 %v4430_v57, %v2408_v19  ;;  %v5000_v57 = vld [vmem:[%s5990_s7 + $0x150] sm:$0xff]   ;;  %v5002_v59 = vld [vmem:[%s5990_s7 + $0x158] sm:$0xff]  }
 0x3e7   : > { %v5001_v58 = vld [vmem:[%s5990_s7 + $0x110] sm:$0xff]  }
 0x3e8   : > { %v2475_v63 = vadd.f32 %v4433_v61, %v2411_v21  ;;  %v5004_v61 = vld [vmem:[%s5990_s7 + $0xc0] sm:$0xff]  }
 0x3e9   : > { %4493 = vmatprep.subr.bf16.mxu1 %v5004_v61 }
 0x3ea   : > { %v4434_v0 = vpop.f32.mrb[108].mxu0 }
 0x3eb   : > { %v4435_v2 = vpop.f32.mrb[109].mxu0 }
 0x3ec   : > { %v4436_v3 = vadd.f32 %v4435_v2, %v4434_v0  ;;  %v4437_v4 = vpop.f32.mrb[110].mxu0  ;;  %v5012_v0 = vld [vmem:[%s5990_s7 + $0x168] sm:$0xff]  }
 0x3ed   : > { %v4438_v5 = vpop.f32.mrb[111].mxu0  ;;  %v5014_v2 = vld [vmem:[%s5990_s7 + $0x128] sm:$0xff]  }
 0x3ee   : > { %v4439_v6 = vadd.f32 %v4438_v5, %v4437_v4  ;;  %v2480_v7 = vadd.f32 %v4436_v3, %v2416_v29  ;;  %v5019_v3 = vld [vmem:[%s5990_s7 + $0x170] sm:$0xff]   ;;  %v5025_v5 = vld [vmem:[%s5990_s7 + $0x178] sm:$0xff]  }
 0x3ef   : > { %v5021_v4 = vld [vmem:[%s5990_s7 + $0x130] sm:$0xff]  }
 0x3f0   : > { %v2483_v8 = vadd.f32 %v4439_v6, %v2419_v31  ;;  %v5027_v6 = vld [vmem:[%s5990_s7 + $0x138] sm:$0xff]  }
 0x3f2   : > { %v4440_v9 = vpop.f32.mrb[112].mxu0 }
 0x3f3   : > { %v4441_v10 = vpop.f32.mrb[113].mxu0 }
 0x3f4   : > { %v4442_v11 = vadd.f32 %v4441_v10, %v4440_v9  ;;  %v4443_v12 = vpop.f32.mrb[114].mxu0 }
 0x3f5   : > { %v4444_v13 = vpop.f32.mrb[115].mxu0 }
 0x3f6   : > { %v2488_v14 = vadd.f32 %v4442_v11, %v2424_v37 }
 0x3fb   : > { %v4654_v15 = vpop.f32.mrb[116].mxu0 }
 0x3fc   : > { %v2536_v16 = vadd.f32 %v4654_v15, %v2472_v62  ;;  %v2527_v17 = vpop.f32.mrb[117].mxu0  ;;  %v5006_v62 = vld [vmem:[%s5990_s7 + $0x160] sm:$0xff]  }
 0x3fd   : > { %v2528_v18 = vadd.f32 %v2527_v17, %v2464_v50  ;;  %v4655_v22 = vpop.f32.mrb[118].mxu0  ;;  %v4981_v50 = vld [vmem:[%s5989_s6 + $0x30] sm:$0xff]  }
 0x3fe   : > { %v2539_v24 = vadd.f32 %v4655_v22, %v2475_v63  ;;  %v2530_v19 = vpop.f32.mrb[119].mxu0  ;;  %v2559_v21 = vmax.f32 %v2536_v16, 0.0  ;;  %v5007_v63 = vld [vmem:[%s5990_s7 + $0x120] sm:$0xff]  }
 0x3ff   : > { %v2531_v20 = vadd.f32 %v2530_v19, %v2467_v52  ;;  %v2557_v25 = vmax.f32 %v2528_v18, 0.0  ;;  %v4985_v52 = vld [vmem:[%s5989_s6 + $0x40] sm:$0xff]  }
 0x400   : > { %v2560_v23 = vmax.f32 %v2539_v24, 0.0 }
 0x401   : > { %v2558_v26 = vmax.f32 %v2531_v20, 0.0 }
 0x402   : > { %v2583_v27 = vpack.c.bf16 %v2560_v23, %v2559_v21 }
 0x403   : > { %v2582_v28 = vpack.c.bf16 %v2558_v26, %v2557_v25 }
 0x405   : > { %4661 = vmatpush3.bf16.msra.mxu0 %v2582_v28 }
 0x406   : > { %4662 = vmatprep.subr.bf16.mxu0 %v5061_v1 }
 0x409   : > { %v4658_v29 = vpop.f32.mrb[120].mxu0  ;;  %4663 = vmatpush3.bf16.msra.mxu0 %v2583_v27 }
 0x40a   : > { %v2552_v30 = vadd.f32 %v4658_v29, %v2488_v14  ;;  %v2543_v31 = vpop.f32.mrb[121].mxu0  ;;  %4664 = vmatprep.subr.bf16.mxu0 %v5061_v1 }
 0x40b   : > { %v2544_v32 = vadd.f32 %v2543_v31, %v2480_v7  ;;  %v4659_v33 = vpop.f32.mrb[122].mxu0  ;;  %v5008_v31 = vld [vmem:[%s5990_s7 + $0xc8] sm:$0xff]  }
 0x40c   : > { %v2546_v34 = vpop.f32.mrb[123].mxu0  ;;  %v2563_v36 = vmax.f32 %v2552_v30, 0.0  ;;  %v5005_v30 = vld [vmem:[%s5990_s7 + $0x80] sm:$0xff]  }
 0x40d   : > { %v2547_v35 = vadd.f32 %v2546_v34, %v2483_v8  ;;  %v2561_v37 = vmax.f32 %v2544_v32, 0.0  ;;  %v5009_v34 = vld [vmem:[%s5990_s7 + $0x88] sm:$0xff]  }
 0x40e   : > { %v2585_v40 = vpack.c.bf16 %v2563_v36, %v2563_v36  ;;  %v5010_v36 = vld [vmem:[%s5990_s7 + $0xd0] sm:$0xff]  }
 0x40f   : > { %v2562_v38 = vmax.f32 %v2547_v35, 0.0 }
 0x410   : > { %v2661_v42 = vsel %vm2659_vm3, %v2585_v40, 0  ;;  %v5013_v40 = vld [vmem:[%s5990_s7 + $0xd8] sm:$0xff]  }
 0x411   : > { %v2584_v39 = vpack.c.bf16 %v2562_v38, %v2561_v37 }
 0x413   : > { %4665 = vmatpush3.bf16.msra.mxu0 %v2584_v39  ;;  %v5011_v39 = vld [vmem:[%s5990_s7 + $0x90] sm:$0xff]  }
 0x414   : > { %4666 = vmatprep.subr.bf16.mxu0 %v5061_v1 }
 0x417   : > { %4667 = vmatpush3.bf16.msra.mxu0 %v2661_v42 }
 0x418   : > { %4515 = vmatprep.subr.bf16.mxu0 %v4994_v41 }
 0x41a   : > { %4669 = vmatmul.mubr.msk.bf16.vlgmr.msra.gmra.mrb[124].mxu0 %vm2631_vm4, %v4973_v43 }
 0x41b   : > { %4672 = vmatprep.mubr.msk.bf16.mxu0 %vm5062_vm0, %v5061_v1  ;;  %4516 = vmatpush3.bf16.msra.mxu0 %v4995_v44  ;;  %v5015_v44 = vld [vmem:[%s5990_s7 + $0x98] sm:$0xff]  }
 0x41c   : > { %4517 = vmatprep.subr.bf16.mxu0 %v4998_v55 }
 0x41f   : > { %4518 = vmatpush3.bf16.msra.mxu0 %v4999_v56  ;;  %v5022_v56 = vld [vmem:[%s5990_s7 + $0xf0] sm:$0xff]  }
 0x420   : > { %4519 = vmatprep.subr.bf16.mxu0 %v5000_v57 }
 0x422   : > { %4673 = vmatmul.mubr.msk.bf16.gmra.mrb[128].mxu0 %vm2631_vm4, %v4974_v45 }
 0x423   : > { %4676 = vmatprep.mubr.msk.bf16.mxu0 %vm5062_vm0, %v5061_v1  ;;  %4520 = vmatpush3.bf16.msra.mxu0 %v5001_v58 }
 0x424   : > { %4521 = vmatprep.subr.bf16.mxu0 %v5002_v59  ;;  %v5023_v59 = vld [vmem:[%s5990_s7 + $0xb0] sm:$0xff]  }
 0x427   : > { %4522 = vmatpush3.bf16.msra.mxu0 %v5003_v60  ;;  %v5024_v60 = vld [vmem:[%s5990_s7 + $0xf8] sm:$0xff]  }
 0x428   : > { %4523 = vmatprep.subr.bf16.mxu0 %v5006_v62 }
 0x42a   : > { %4677 = vmatmul.mubr.msk.bf16.gmra.mrb[132].mxu0 %vm2631_vm4, %v4975_v46  ;;  %v5016_v46 = vld [vmem:[%s5990_s7 + $0xe0] sm:$0xff]  }
 0x42b   : > { %4680 = vmatprep.mubr.msk.bf16.mxu0 %vm5062_vm0, %v5061_v1  ;;  %4524 = vmatpush3.bf16.msra.mxu0 %v5007_v63  ;;  %v5026_v63 = vld [vmem:[%s5990_s7 + $0xb8] sm:$0xff]  }
 0x42c   : > { %4525 = vmatprep.subr.bf16.mxu0 %v5012_v0 }
 0x42f   : > { %4526 = vmatpush3.bf16.msra.mxu0 %v5014_v2 }
 0x430   : > { %4527 = vmatprep.subr.bf16.mxu0 %v5019_v3  ;;  %v5028_v3 = vld [vmem:[%s5990_s7 + $0x1c0] sm:$0xff]  }
 0x432   : > { %4681 = vmatmul.mubr.msk.bf16.gmra.mrb[136].mxu0 %vm2631_vm4, %v4978_v47 }
 0x433   : > { %4684 = vmatprep.mubr.msk.bf16.mxu0 %vm5062_vm0, %v5061_v1  ;;  %4528 = vmatpush3.bf16.msra.mxu0 %v5021_v4 }
 0x434   : > { %4529 = vmatprep.subr.bf16.mxu0 %v5025_v5 }
 0x437   : > { %4530 = vmatpush3.bf16.msra.mxu0 %v5027_v6 }
 0x438   : > { %4704 = vmatprep.subr.bf16.mxu0 %v5061_v1 }
 0x43a   : > { %4685 = vmatmul.mubr.msk.bf16.gmra.mrb[140].mxu0 %vm2631_vm4, %v4979_v48 }
 0x43b   : > { %4688 = vmatprep.mubr.msk.bf16.mxu0 %vm5062_vm0, %v5061_v1 }
 0x442   : > { %4689 = vmatmul.mubr.msk.bf16.gmra.mrb[144].mxu0 %vm2631_vm4, %v4980_v49 }
 0x443   : > { %4692 = vmatprep.mubr.msk.bf16.mxu0 %vm5062_vm0, %v5061_v1 }
 0x44a   : > { %4693 = vmatmul.mubr.msk.bf16.gmra.mrb[148].mxu0 %vm2631_vm4, %v4981_v50  ;;  %v5017_v50 = vld [vmem:[%s5990_s7 + $0xa0] sm:$0xff]  }
 0x44b   : > { %4696 = vmatprep.mubr.msk.bf16.mxu0 %vm5062_vm0, %v5061_v1 }
 0x452   : > { %4697 = vmatmul.mubr.msk.bf16.gmra.mrb[152].mxu0 %vm2631_vm4, %v4984_v51  ;;  %v5018_v51 = vld [vmem:[%s5990_s7 + $0xe8] sm:$0xff]  }
 0x453   : > { %4700 = vmatprep.mubr.msk.bf16.mxu0 %vm5062_vm0, %v5061_v1 }
 0x45a   : > { %4701 = vmatmul.mubr.msk.bf16.gmra.mrb[156].mxu0 %vm2631_vm4, %v4985_v52 }
 0x4ed   : > { %v2697_v7 = vpop.f32.mrb[124].mxu0 }
 0x4ee   : > { %v4670_v8 = vpop.f32.mrb[125].mxu0 }
 0x4ef   : > { %v2700_v9 = vpop.f32.mrb[126].mxu0  ;;  %v5029_v8 = vld [vmem:[%s5990_s7 + $0x180] sm:$0xff]  }
 0x4f0   : > { %v4201_v10 = vpack.c.bf16 %v2700_v9, %v2700_v9  ;;  %v4671_v11 = vpop.f32.mrb[127].mxu0  ;;  %v5030_v9 = vld [vmem:[%s5990_s7 + $0x200] sm:$0xff]  }
 0x4f1   : > { %v5031_v11 = vld [vmem:[%s5990_s7 + $0x1c8] sm:$0xff]  }
 0x4f2   : > { %2777 = vst [vmem:[#allocation2 + $0x24] sm:$0xf] %v4201_v10 }
 0x4f5   : > { %v2705_v12 = vpop.f32.mrb[128].mxu0 }
 0x4f6   : > { %v4221_v13 = vpack.c.bf16 %v2705_v12, %v2697_v7  ;;  %v4674_v14 = vpop.f32.mrb[129].mxu0 }
 0x4f7   : > { %v2708_v15 = vpop.f32.mrb[130].mxu0 }
 0x4f8   : > { %4222 = vst [vmem:[#allocation2] sm:$0xff] %v4221_v13   ;;  %v4675_v16 = vpop.f32.mrb[131].mxu0 }
 0x4f9   : > { %v5033_v16 = vld [vmem:[%s5990_s7 + $0x208] sm:$0xff]  }
 0x4fd   : > { %v2713_v17 = vpop.f32.mrb[132].mxu0 }
 0x4fe   : > { %v4678_v18 = vpop.f32.mrb[133].mxu0 }
 0x4ff   : > { %v2716_v22 = vpop.f32.mrb[134].mxu0  ;;  %v5034_v18 = vld [vmem:[%s5990_s7 + $0x1d0] sm:$0xff]  }
 0x500   : > { %v4226_v24 = vpack.c.bf16 %v2716_v22, %v2708_v15  ;;  %v4679_v19 = vpop.f32.mrb[135].mxu0  ;;  %v5032_v15 = vld [vmem:[%s5990_s7 + $0x188] sm:$0xff]  }
 0x501   : > { %v5035_v19 = vld [vmem:[%s5990_s7 + $0x190] sm:$0xff]  }
 0x502   : > { %4258 = vst [vmem:[#allocation2 + $0x28] sm:$0xff] %v4226_v24  }
 0x505   : > { %v2721_v20 = vpop.f32.mrb[136].mxu0 }
 0x506   : > { %v5837_v21 = vpack.c.bf16 %v2721_v20, %v2713_v17  ;;  %v4682_v23 = vpop.f32.mrb[137].mxu0  ;;  %v5036_v20 = vld [vmem:[%s5990_s7 + $0x210] sm:$0xff]  }
 0x507   : > { %v2724_v25 = vpop.f32.mrb[138].mxu0  ;;  %v5038_v23 = vld [vmem:[%s5990_s7 + $0x198] sm:$0xff]  }
 0x508   : > { %4259 = vst [vmem:[#allocation2 + $0x8] sm:$0xff] %v5837_v21   ;;  %v4683_v26 = vpop.f32.mrb[139].mxu0 }
 0x509   : > { %v2863_v27 = vld [vmem:[#allocation2 + $0x24] sm:$0xff] }
 0x50a   : > { %v4055_v28 = vcombine.low %v4221_v13, %v2863_v27  ;;  %v4056_v29 = vcombine.high %v4221_v13, %v2863_v27  ;;  %v5040_v26 = vld [vmem:[%s5990_s7 + $0x1e0] sm:$0xff]  }
 0x50c   : > { %3529 = vmatprep.mubr.bf16.mxu1 %v4056_v29  ;;  %v5041_v29 = vld [vmem:[%s5990_s7 + $0x1a0] sm:$0xff]  }
 0x50d   : > { %v2729_v32 = vpop.f32.mrb[140].mxu0  ;;  %3530 = vmatmul.mubr.bf16.vlgmr.msra.gmra.mrb[128].mxu1 %v4055_v28 }
 0x50e   : > { %4494 = vmatpush3.bf16.msra.mxu1 %v5005_v30  ;;  %v4686_v33 = vpop.f32.mrb[141].mxu0  ;;  %v5042_v30 = vld [vmem:[%s5990_s7 + $0x220] sm:$0xff]  }
 0x50f   : > { %v2732_v35 = vpop.f32.mrb[142].mxu0  ;;  %4495 = vmatprep.subr.bf16.mxu1 %v5008_v31  ;;  %v5043_v31 = vld [vmem:[%s5990_s7 + $0x1e8] sm:$0xff]  }
 0x510   : > { %v4236_v37 = vpack.c.bf16 %v2732_v35, %v2724_v25  ;;  %v4687_v38 = vpop.f32.mrb[143].mxu0  ;;  %v5039_v25 = vld [vmem:[%s5990_s7 + $0x218] sm:$0xff]   ;;  %v5045_v33 = vld [vmem:[%s5990_s7 + $0x228] sm:$0xff]   ;;  %v5047_v35 = vld [vmem:[%s5990_s7 + $0x1b0] sm:$0xff]  }
 0x511   : > { %v5050_v38 = vld [vmem:[%s5990_s7 + $0x1b8] sm:$0xff]  }
 0x512   : > { %4260 = vst [vmem:[#allocation2 + $0x30] sm:$0xff] %v4236_v37   ;;  %4496 = vmatpush3.bf16.msra.mxu1 %v5009_v34  ;;  %v5046_v34 = vld [vmem:[%s5990_s7 + $0x1f0] sm:$0xff]   ;;  %v5049_v37 = vld [vmem:[%s5990_s7 + $0x1f8] sm:$0xff]  }
 0x513   : > { %4497 = vmatprep.subr.bf16.mxu1 %v5010_v36  ;;  %v5048_v36 = vld [vmem:[%s5990_s7 + $0x230] sm:$0xff]  }
 0x515   : > { %v2737_v41 = vpop.f32.mrb[144].mxu0 }
 0x516   : > { %v4241_v42 = vpack.c.bf16 %v2737_v41, %v2729_v32  ;;  %4498 = vmatpush3.bf16.msra.mxu1 %v5011_v39  ;;  %v4690_v43 = vpop.f32.mrb[145].mxu0  ;;  %v5044_v32 = vld [vmem:[%s5990_s7 + $0x1a8] sm:$0xff]   ;;  %v5051_v39 = vld [vmem:[%s5990_s7 + $0x238] sm:$0xff]  }
 0x517   : > { %4499 = vmatprep.subr.bf16.mxu1 %v5013_v40  ;;  %v2740_v45 = vpop.f32.mrb[146].mxu0 }
 0x518   : > { %4261 = vst [vmem:[#allocation2 + $0x10] sm:$0xff] %v4241_v42   ;;  %v4691_v47 = vpop.f32.mrb[147].mxu0 }
 0x519   : > { %v2864_v48 = vld [vmem:[#allocation2 + $0x2c] sm:$0xff] }
 0x51a   : > { %4500 = vmatpush3.bf16.msra.mxu1 %v5015_v44  ;;  %v4058_v49 = vcombine.high %v5837_v21, %v2864_v48  ;;  %v4057_v10 = vcombine.low %v5837_v21, %v2864_v48  ;;  %v5037_v21 = vld [vmem:[%s5990_s7 + $0x1d8] sm:$0xff]   ;;  %v4054_v48 = vld [vmem:[%s5991_s8] ss:$0 sm:$0xff] }
 0x51b   : > { %4501 = vmatprep.subr.bf16.mxu1 %v5016_v46 }
 0x51c   : > { %3570 = vmatprep.mubr.bf16.mxu1 %v4058_v49 }
 0x51d   : > { %v2745_v52 = vpop.f32.mrb[148].mxu0 }
 0x51e   : > { %4502 = vmatpush3.bf16.msra.mxu1 %v5017_v50  ;;  %v4694_v53 = vpop.f32.mrb[149].mxu0 }
 0x51f   : > { %v2748_v55 = vpop.f32.mrb[150].mxu0  ;;  %4503 = vmatprep.subr.bf16.mxu1 %v5018_v51 }
 0x520   : > { %v4246_v57 = vpack.c.bf16 %v2748_v55, %v2740_v45  ;;  %v4695_v58 = vpop.f32.mrb[151].mxu0 }
 0x522   : > { %4262 = vst [vmem:[#allocation2 + $0x38] sm:$0xff] %v4246_v57   ;;  %4504 = vmatpush3.bf16.msra.mxu1 %v5020_v54 }
 0x523   : > { %4505 = vmatprep.subr.bf16.mxu1 %v5022_v56 }
 0x525   : > { %v2753_v61 = vpop.f32.mrb[152].mxu0 }
 0x526   : > { %v5883_v62 = vpack.c.bf16 %v2753_v61, %v2745_v52  ;;  %4506 = vmatpush3.bf16.msra.mxu1 %v5023_v59  ;;  %v4698_v0 = vpop.f32.mrb[153].mxu0 }
 0x527   : > { %4507 = vmatprep.subr.bf16.mxu1 %v5024_v60  ;;  %v2756_v2 = vpop.f32.mrb[154].mxu0 }
 0x528   : > { %4263 = vst [vmem:[#allocation2 + $0x18] sm:$0xff] %v5883_v62   ;;  %v4699_v4 = vpop.f32.mrb[155].mxu0 }
 0x529   : > { %v2865_v5 = vld [vmem:[#allocation2 + $0x34] sm:$0xff] }
 0x52a   : > { %4508 = vmatpush3.bf16.msra.mxu1 %v5026_v63  ;;  %v4059_v6 = vcombine.low %v4241_v42, %v2865_v5  ;;  %v4060_v7 = vcombine.high %v4241_v42, %v2865_v5 }
 0x52b   : > { %4537 = vmatprep.subr.bf16.mxu1 %v5028_v3 }
 0x52c   : > { %3611 = vmatprep.mubr.bf16.mxu0 %v4060_v7 }
 0x52d   : > { %3571 = vmatmul.mubr.bf16.vlgmr.msra.gmra.mrb[132].mxu1 %v4057_v10  ;;  %v2761_v12 = vpop.f32.mrb[156].mxu0  ;;  %3612 = vmatmul.mubr.bf16.vlgmr.msra.gmra.mrb[160].mxu0 %v4059_v6 }
 0x52e   : > { %v4216_v13 = vpack.c.bf16 %v2761_v12, %v2761_v12  ;;  %4538 = vmatpush3.bf16.msra.mxu1 %v5029_v8  ;;  %4705 = vmatpush3.bf16.msra.mxu0 %v5030_v9  ;;  %v4702_v14 = vpop.f32.mrb[157].mxu0 }
 0x52f   : > { %v2764_v17 = vpop.f32.mrb[158].mxu0  ;;  %4539 = vmatprep.subr.bf16.mxu1 %v5031_v11  ;;  %4706 = vmatprep.subr.bf16.mxu0 %v5061_v1 }
 0x530   : > { %2856 = vst [vmem:[#allocation2 + $0x20] sm:$0xf] %v4216_v13  ;;  %v4256_v22 = vpack.c.bf16 %v2764_v17, %v2756_v2  ;;  %v4703_v24 = vpop.f32.mrb[159].mxu0  ;;  %4720 = vmatprep.mubr.msk.bf16.mxu0 %vm5062_vm0, %v5061_v1 }
 0x532   : > { %4264 = vst [vmem:[#allocation2 + $0x40] sm:$0xff] %v4256_v22   ;;  %4540 = vmatpush3.bf16.msra.mxu1 %v5032_v15  ;;  %4707 = vmatpush3.bf16.msra.mxu0 %v5033_v16 }
 0x533   : > { %4541 = vmatprep.subr.bf16.mxu1 %v5034_v18  ;;  %4708 = vmatprep.subr.bf16.mxu0 %v5061_v1 }
 0x536   : > { %4542 = vmatpush3.bf16.msra.mxu1 %v5035_v19  ;;  %4709 = vmatpush3.bf16.msra.mxu0 %v5036_v20 }
 0x537   : > { %4543 = vmatprep.subr.bf16.mxu1 %v5037_v21  ;;  %4710 = vmatprep.subr.bf16.mxu0 %v5061_v1 }
 0x539   : > { %v2866_v27 = vld [vmem:[#allocation2 + $0x3c] sm:$0xff] }
 0x53a   : > { %4544 = vmatpush3.bf16.msra.mxu1 %v5038_v23  ;;  %4711 = vmatpush3.bf16.msra.mxu0 %v5039_v25  ;;  %v4062_v28 = vcombine.high %v5883_v62, %v2866_v27  ;;  %v4061_v40 = vcombine.low %v5883_v62, %v2866_v27  ;;  %v5052_v41 = vld [vmem:[#allocation2 + $0x20] ss:$36 sps:$4 sm:$0xff]  }
 0x53b   : > { %4545 = vmatprep.subr.bf16.mxu1 %v5040_v26  ;;  %4712 = vmatprep.subr.bf16.mxu0 %v5061_v1 }
 0x53c   : > { %3652 = vmatprep.mubr.bf16.mxu1 %v4062_v28 }
 0x53e   : > { %4546 = vmatpush3.bf16.msra.mxu1 %v5041_v29  ;;  %4713 = vmatpush3.bf16.msra.mxu0 %v5042_v30 }
 0x53f   : > { %4547 = vmatprep.subr.bf16.mxu1 %v5043_v31  ;;  %4714 = vmatprep.subr.bf16.mxu0 %v5061_v1 }
 0x542   : > { %4548 = vmatpush3.bf16.msra.mxu1 %v5044_v32  ;;  %4715 = vmatpush3.bf16.msra.mxu0 %v5045_v33 }
 0x543   : > { %4549 = vmatprep.subr.bf16.mxu1 %v5046_v34  ;;  %4716 = vmatprep.subr.bf16.mxu0 %v5061_v1 }
 0x546   : > { %4550 = vmatpush3.bf16.msra.mxu1 %v5047_v35  ;;  %4717 = vmatpush3.bf16.msra.mxu0 %v5048_v36 }
 0x547   : > { %4551 = vmatprep.subr.bf16.mxu1 %v5049_v37  ;;  %4718 = vmatprep.subr.bf16.mxu0 %v5061_v1 }
 0x54a   : > { %4552 = vmatpush3.bf16.msra.mxu1 %v5050_v38  ;;  %4719 = vmatpush3.bf16.msra.mxu0 %v5051_v39 }
 0x54d   : > { %3653 = vmatmul.mubr.bf16.vlgmr.msra.gmra.mrb[136].mxu1 %v4061_v40  ;;  %4721 = vmatmul.mubr.bf16.vlgmr.msra.gmra.mrb[164].mxu0 %v5052_v41 }
 0x5e0   : > { %v4487_v42 = vpop.f32.mrb[128].mxu1 }
 0x5e1   : > { %v4488_v43 = vpop.f32.mrb[129].mxu1 }
 0x5e2   : > { %v4489_v44 = vadd.f32 %v4488_v43, %v4487_v42  ;;  %v4490_v45 = vpop.f32.mrb[130].mxu1 }
 0x5e3   : > { %v4491_v46 = vpop.f32.mrb[131].mxu1 }
 0x5e4   : > { %v4492_v47 = vadd.f32 %v4491_v46, %v4490_v45  ;;  %v3532_v52 = vadd.f32 %v4489_v44, %v4054_v48 }
 0x5e6   : > { %v3535_v59 = vadd.f32 %v4492_v47, %v4054_v48 }
 0x600   : > { %v4509_v49 = vpop.f32.mrb[132].mxu1  ;;  %v4531_v50 = vpop.f32.mrb[160].mxu0 }
 0x601   : > { %v4510_v1 = vpop.f32.mrb[133].mxu1  ;;  %v4532_v51 = vpop.f32.mrb[161].mxu0 }
 0x602   : > { %v4511_v53 = vadd.f32 %v4510_v1, %v4509_v49  ;;  %v4512_v54 = vpop.f32.mrb[134].mxu1  ;;  %v4533_v55 = vadd.f32 %v4532_v51, %v4531_v50  ;;  %v4534_v56 = vpop.f32.mrb[162].mxu0 }
 0x603   : > { %v4513_v57 = vpop.f32.mrb[135].mxu1  ;;  %v4535_v58 = vpop.f32.mrb[163].mxu0 }
 0x604   : > { %v3573_v60 = vadd.f32 %v4511_v53, %v3532_v52  ;;  %v4514_v61 = vadd.f32 %v4513_v57, %v4512_v54  ;;  %v4536_v62 = vadd.f32 %v4535_v58, %v4534_v56 }
 0x606   : > { %v3614_v63 = vadd.f32 %v4533_v55, %v3573_v60  ;;  %v3576_v0 = vadd.f32 %v4514_v61, %v3535_v59 }
 0x608   : > { %v3617_v2 = vadd.f32 %v4536_v62, %v3576_v0 }
 0x620   : > { %v4553_v3 = vpop.f32.mrb[136].mxu1  ;;  %v3695_v4 = vpop.f32.mrb[164].mxu0 }
 0x621   : > { %v4554_v5 = vpop.f32.mrb[137].mxu1  ;;  %v4722_v6 = vpop.f32.mrb[165].mxu0 }
 0x622   : > { %v4555_v7 = vadd.f32 %v4554_v5, %v4553_v3  ;;  %v4556_v8 = vpop.f32.mrb[138].mxu1  ;;  %v3698_v9 = vpop.f32.mrb[166].mxu0 }
 0x623   : > { %v4557_v10 = vpop.f32.mrb[139].mxu1  ;;  %v4723_v11 = vpop.f32.mrb[167].mxu0 }
 0x624   : > { %v3655_v12 = vadd.f32 %v4555_v7, %v3614_v63  ;;  %v4558_v13 = vadd.f32 %v4557_v10, %v4556_v8 }
 0x626   : > { %v3696_v14 = vadd.f32 %v3695_v4, %v3655_v12  ;;  %v3658_v15 = vadd.f32 %v4558_v13, %v3617_v2 }
 0x628   : > { %v3699_v16 = vadd.f32 %v3698_v9, %v3658_v15  ;;  %v3702_v17 = vmax.f32 %v3696_v14, 0.0 }
 0x62a   : > { %v3703_v18 = vmax.f32 %v3699_v16, 0.0 }
 0x62c   : > { %v3704_v22 = vadd.f32 %v3703_v18, %v3702_v17 }
 0x62e   : > { %v3705_v24 = vrot.slane %v3704_v22, 4 }
 0x630   : > { %v3706_v19 = vadd.f32 %v3705_v24, %v3704_v22 }
 0x632   : > { %v3707_v20 = vrot.slane %v3706_v19, 2 }
 0x634   : > { %v3708_v21 = vadd.f32 %v3707_v20, %v3706_v19 }
 0x636   : > { %v3709_v23 = vrot.slane %v3708_v21, 1  ;;  %37 = sbr.rel (!%p35_p0) target bundleno = 1 (0x1), region = 65 }
 0x638   : > { %v3710_v25 = vadd.f32 %v3709_v23, %v3708_v21 }
 0x63a   : > { %v3712_v26 = vmul.f32 0.0625, %v3710_v25 }
 0x63c   : > { %3714 = vst [vmem:[%s3713_s10] sm:$0x1] %v3712_v26 }

</bundles_post_ra>
